<compile_context>
chip_gen: v7x
topology: tpu7x:2x2x1
jax: 0.10.0
libtpu: 0.0.40
codegen_flags: <defaults>
</compile_context>

<pallas_src>
import functools
import math

import jax
import jax.numpy as jnp
from jax import lax
from jax.experimental import pallas as pl
from jax.experimental.pallas import tpu as pltpu

LN_EPS = 1e-5


def _layernorm(x, gamma, beta):
    # x: (..., H) f32, gamma/beta: (1, H) f32
    mean = jnp.mean(x, axis=-1, keepdims=True)
    var = jnp.mean((x - mean) ** 2, axis=-1, keepdims=True)
    inv = lax.rsqrt(var + LN_EPS)
    return (x - mean) * inv * gamma + beta


def _gelu_tanh(x):
    # Megatron-style tanh-approximate GELU (VPU + EUP friendly).
    return 0.5 * x * (1.0 + jnp.tanh(0.7978845608028654 * (x + 0.044715 * x * x * x)))


def lm_kernel(
    x_ref,
    ln1_g_ref, ln1_b_ref,
    wqkv_ref, bqkv_ref,
    wo_ref, bo_ref,
    ln2_g_ref, ln2_b_ref,
    w1_ref, b1_ref,
    w2_ref, b2_ref,
    o_ref,
    *, num_heads,
):
    layer = pl.program_id(1)

    # First layer for this batch element: seed the resident activation block.
    @pl.when(layer == 0)
    def _():
        o_ref[0] = x_ref[0]

    x = o_ref[0].astype(jnp.float32)            # (S, H) resident activation
    S, H = x.shape
    d = H // num_heads
    scale = 1.0 / math.sqrt(d)

    # ---------------- self-attention sub-block ----------------
    ln1 = _layernorm(x, ln1_g_ref[0], ln1_b_ref[0])
    qkv = jnp.dot(ln1.astype(jnp.bfloat16), wqkv_ref[0],
                  preferred_element_type=jnp.float32) + bqkv_ref[0]     # (S, 3H) f32

    # TODO(synk): fused QKV assumed laid out as [Wq | Wk | Wv]; Megatron
    # checkpoints interleave q/k/v per head — reorder columns when loading
    # real weights.
    q = qkv[:, :H] * scale          # fold 1/sqrt(d) into q once
    k = qkv[:, H:2 * H]
    v = qkv[:, 2 * H:]

    # One head-major relayout up front; batched matmuls keep the MXU fed.
    q3 = jnp.transpose(q.reshape(S, num_heads, d), (1, 0, 2)).astype(jnp.bfloat16)
    k3 = jnp.transpose(k.reshape(S, num_heads, d), (1, 0, 2)).astype(jnp.bfloat16)
    v3 = jnp.transpose(v.reshape(S, num_heads, d), (1, 0, 2)).astype(jnp.bfloat16)

    scores = jnp.einsum('hqd,hkd->hqk', q3, k3,
                        preferred_element_type=jnp.float32)             # (n, S, S)

    # Causal mask (LM: no attention to future positions).
    row = lax.broadcasted_iota(jnp.int32, (S, S), 0)
    col = lax.broadcasted_iota(jnp.int32, (S, S), 1)
    causal = jnp.broadcast_to((col <= row)[None, :, :], scores.shape)
    scores = jnp.where(causal, scores, -1e30)

    scores = scores - jnp.max(scores, axis=-1, keepdims=True)
    p = jnp.exp(scores)
    p = p * pl.reciprocal(jnp.sum(p, axis=-1, keepdims=True), approx=True)

    ctx = jnp.einsum('hqk,hkd->hqd', p.astype(jnp.bfloat16), v3,
                     preferred_element_type=jnp.float32)                # (n, S, d)
    ctx = jnp.transpose(ctx, (1, 0, 2)).reshape(S, H)                   # (S, H)

    attn_out = jnp.dot(ctx.astype(jnp.bfloat16), wo_ref[0],
                       preferred_element_type=jnp.float32) + bo_ref[0]
    x = x + attn_out

    # ---------------- MLP sub-block ----------------
    ln2 = _layernorm(x, ln2_g_ref[0], ln2_b_ref[0])
    h1 = jnp.dot(ln2.astype(jnp.bfloat16), w1_ref[0],
                 preferred_element_type=jnp.float32) + b1_ref[0]        # (S, 4H)
    h1 = _gelu_tanh(h1)
    mlp_out = jnp.dot(h1.astype(jnp.bfloat16), w2_ref[0],
                      preferred_element_type=jnp.float32) + b2_ref[0]

    o_ref[0] = (x + mlp_out).astype(o_ref.dtype)


def lm_model_pallas(x, params, *, num_heads):
    """Run the whole LM (all layers) in one pallas_call.

    x:       (B, S, H) f32
    params:  dict of stacked per-layer arrays, leading dim L.
    """
    B, S, H = x.shape
    L = params["wqkv"].shape[0]

    act_spec = pl.BlockSpec((1, S, H), lambda b, l: (b, 0, 0))

    def wspec(shape):
        # per-layer weight/bias block: indexed by the layer axis only
        return pl.BlockSpec((1,) + shape, lambda b, l: (l, 0, 0))

    # VMEM budget: double-buffered bf16 weights + resident activation blocks
    # + in-kernel intermediates, with headroom.  Clamped to stay inside every
    # chip generation's physical VMEM (v7x = 64 MiB).
    bf16_w_bytes = 2 * (H * 3 * H + H * H + H * 4 * H + 4 * H * H)
    act_bytes = 2 * 2 * S * H * 4                       # x + out blocks, 2-buffered
    interm_bytes = 4 * (S * 3 * H + S * 4 * H + num_heads * S * S + 4 * S * H)
    vmem_limit = int(min(max(2 * bf16_w_bytes + act_bytes + interm_bytes + (4 << 20),
                             16 << 20),
                         64 << 20))

    kernel = functools.partial(lm_kernel, num_heads=num_heads)

    return pl.pallas_call(
        kernel,
        out_shape=jax.ShapeDtypeStruct((B, S, H), x.dtype),
        grid=(B, L),
        in_specs=[
            act_spec,                                        # x
            wspec((1, H)), wspec((1, H)),                    # ln1 gamma/beta
            wspec((H, 3 * H)), wspec((1, 3 * H)),            # W_qkv, b_qkv
            wspec((H, H)), wspec((1, H)),                    # W_o, b_o
            wspec((1, H)), wspec((1, H)),                    # ln2 gamma/beta
            wspec((H, 4 * H)), wspec((1, 4 * H)),            # W1, b1
            wspec((4 * H, H)), wspec((1, H)),                # W2, b2
        ],
        out_specs=act_spec,
        compiler_params=pltpu.CompilerParams(
            dimension_semantics=("parallel", "arbitrary"),   # batch parallel, layers sequential
            vmem_limit_bytes=vmem_limit,
        ),
    )(
        x,
        params["ln1_g"], params["ln1_b"],
        params["wqkv"], params["bqkv"],
        params["wo"], params["bo"],
        params["ln2_g"], params["ln2_b"],
        params["w1"], params["b1"],
        params["w2"], params["b2"],
    )


def init_lm_params(key, num_layer, h):
    """Per-layer params stacked along a leading L axis. Weights bf16, rest f32."""
    std = 0.02
    f32, bf16 = jnp.float32, jnp.bfloat16

    def one(k):
        k0, k1, k2, k3 = jax.random.split(k, 4)
        return dict(
            ln1_g=jnp.ones((1, h), f32),
            ln1_b=jnp.zeros((1, h), f32),
            wqkv=(std * jax.random.normal(k0, (h, 3 * h))).astype(bf16),
            bqkv=jnp.zeros((1, 3 * h), f32),
            wo=(std * jax.random.normal(k1, (h, h))).astype(bf16),
            bo=jnp.zeros((1, h), f32),
            ln2_g=jnp.ones((1, h), f32),
            ln2_b=jnp.zeros((1, h), f32),
            w1=(std * jax.random.normal(k2, (h, 4 * h))).astype(bf16),
            b1=jnp.zeros((1, 4 * h), f32),
            w2=(std * jax.random.normal(k3, (4 * h, h))).astype(bf16),
            b2=jnp.zeros((1, h), f32),
        )

    per_layer = [one(k) for k in jax.random.split(key, num_layer)]
    return {name: jnp.stack([p[name] for p in per_layer]) for name in per_layer[0]}


def lm_reference(x, params, num_heads):
    """Pure-JAX reference (same bf16 weights, f32 math) for correctness check."""
    B, S, H = x.shape
    d = H // num_heads
    L = params["wqkv"].shape[0]
    f = lambda a: a.astype(jnp.float32)
    mask = jnp.tril(jnp.ones((S, S), bool))
    for i in range(L):
        ln1 = _layernorm(x, f(params["ln1_g"][i]), f(params["ln1_b"][i]))
        qkv = ln1 @ f(params["wqkv"][i]) + f(params["bqkv"][i])
        q, k, v = qkv[..., :H], qkv[..., H:2 * H], qkv[..., 2 * H:]
        q = q.reshape(B, S, num_heads, d).transpose(0, 2, 1, 3) / math.sqrt(d)
        k = k.reshape(B, S, num_heads, d).transpose(0, 2, 1, 3)
        v = v.reshape(B, S, num_heads, d).transpose(0, 2, 1, 3)
        s = jnp.einsum("bhqd,bhkd->bhqk", q, k)
        s = jnp.where(mask, s, -1e30)
        p = jax.nn.softmax(s, axis=-1)
        ctx = jnp.einsum("bhqk,bhkd->bhqd", p, v).transpose(0, 2, 1, 3).reshape(B, S, H)
        x = x + ctx @ f(params["wo"][i]) + f(params["bo"][i])
        ln2 = _layernorm(x, f(params["ln2_g"][i]), f(params["ln2_b"][i]))
        h1 = _gelu_tanh(ln2 @ f(params["w1"][i]) + f(params["b1"][i]))
        x = x + h1 @ f(params["w2"][i]) + f(params["b2"][i])
    return x


if __name__ == "__main__":
    # LM_Model(num_layer, h, n) — small deterministic shapes.
    num_layer = 2
    h = 128          # hidden size (lane-dense, multiple of 128)
    n = 4            # attention heads
    B, S = 2, 16     # batch, sequence length

    # TODO(synk): `ac=True` (torch.utils.checkpoint) and the mpu tensor/model-
    # parallel re-init are training/memory/parallelism knobs with identical
    # forward math on a single device; nothing to translate for the forward pass.

    key = jax.random.PRNGKey(0)
    kx, kp = jax.random.split(key)
    x = jax.random.normal(kx, (B, S, h), dtype=jnp.float32)
    params = init_lm_params(kp, num_layer, h)

    run = jax.jit(functools.partial(lm_model_pallas, num_heads=n))
    out = jax.block_until_ready(run(x, params))

    assert out.shape == (B, S, h) and out.dtype == jnp.float32
    assert bool(jnp.all(jnp.isfinite(out)))

    ref = lm_reference(x, params, n)
    max_err = float(jnp.max(jnp.abs(out - ref)))
    assert max_err < 0.1, f"mismatch vs reference: {max_err}"

    print("KERNEL_OK")
</pallas_src>

<mosaic_0001>
module attributes {stable_mosaic.version = 11 : i64} {
  func.func @lm_kernel(%arg0: i32, %arg1: i32, %arg2: memref<1x16x128xf32, #tpu.memory_space<vmem>>, %arg3: memref<1x1x128xf32, #tpu.memory_space<vmem>>, %arg4: memref<1x1x128xf32, #tpu.memory_space<vmem>>, %arg5: memref<1x128x384xbf16, #tpu.memory_space<vmem>>, %arg6: memref<1x1x384xf32, #tpu.memory_space<vmem>>, %arg7: memref<1x128x128xbf16, #tpu.memory_space<vmem>>, %arg8: memref<1x1x128xf32, #tpu.memory_space<vmem>>, %arg9: memref<1x1x128xf32, #tpu.memory_space<vmem>>, %arg10: memref<1x1x128xf32, #tpu.memory_space<vmem>>, %arg11: memref<1x128x512xbf16, #tpu.memory_space<vmem>>, %arg12: memref<1x1x512xf32, #tpu.memory_space<vmem>>, %arg13: memref<1x512x128xbf16, #tpu.memory_space<vmem>>, %arg14: memref<1x1x128xf32, #tpu.memory_space<vmem>>, %arg15: memref<1x16x128xf32, #tpu.memory_space<vmem>>) attributes {dimension_semantics = [#tpu.dimension_semantics<parallel>, #tpu.dimension_semantics<arbitrary>], iteration_bounds = array<i64: 2, 2>, scalar_prefetch = 0 : i64, scratch_operands = 0 : i64, tpu.core_type = #tpu.core_type<tc>, window_params = [{transform_indices = @transform_0, window_bounds = array<i64: 1, 16, 128>}, {transform_indices = @transform_1, window_bounds = array<i64: 1, 1, 128>}, {transform_indices = @transform_2, window_bounds = array<i64: 1, 1, 128>}, {transform_indices = @transform_3, window_bounds = array<i64: 1, 128, 384>}, {transform_indices = @transform_4, window_bounds = array<i64: 1, 1, 384>}, {transform_indices = @transform_5, window_bounds = array<i64: 1, 128, 128>}, {transform_indices = @transform_6, window_bounds = array<i64: 1, 1, 128>}, {transform_indices = @transform_7, window_bounds = array<i64: 1, 1, 128>}, {transform_indices = @transform_8, window_bounds = array<i64: 1, 1, 128>}, {transform_indices = @transform_9, window_bounds = array<i64: 1, 128, 512>}, {transform_indices = @transform_10, window_bounds = array<i64: 1, 1, 512>}, {transform_indices = @transform_11, window_bounds = array<i64: 1, 512, 128>}, {transform_indices = @transform_12, window_bounds = array<i64: 1, 1, 128>}, {transform_indices = @transform_13, window_bounds = array<i64: 1, 16, 128>}]} {
    %c0_i32 = arith.constant 0 : i32
    %0 = arith.cmpi eq, %arg1, %c0_i32 : i32
    %1 = arith.extui %0 : i1 to i32
    %c0_i32_0 = arith.constant 0 : i32
    %2 = arith.cmpi ne, %1, %c0_i32_0 : i32
    scf.if %2 {
      %c0_65 = arith.constant 0 : index
      %c0_66 = arith.constant 0 : index
      %c0_67 = arith.constant 0 : index
      %144 = vector.load %arg2[%c0_65, %c0_66, %c0_67] : memref<1x16x128xf32, #tpu.memory_space<vmem>>, vector<1x16x128xf32>
      %145 = vector.shape_cast %144 : vector<1x16x128xf32> to vector<16x128xf32>
      %c0_68 = arith.constant 0 : index
      %c0_69 = arith.constant 0 : index
      %c0_70 = arith.constant 0 : index
      %146 = vector.load %arg15[%c0_68, %c0_69, %c0_70] : memref<1x16x128xf32, #tpu.memory_space<vmem>>, vector<1x16x128xf32>
      %147 = vector.shape_cast %146 : vector<1x16x128xf32> to vector<16x128xf32>
      %148 = vector.shape_cast %145 : vector<16x128xf32> to vector<1x16x128xf32>
      tpu.vector_store %arg15[%c0_68, %c0_69, %c0_70], %148 {strides = array<i32>} : memref<1x16x128xf32, #tpu.memory_space<vmem>>, vector<1x16x128xf32>,
    } else {
    }
    %c0 = arith.constant 0 : index
    %c0_1 = arith.constant 0 : index
    %c0_2 = arith.constant 0 : index
    %3 = vector.load %arg15[%c0, %c0_1, %c0_2] : memref<1x16x128xf32, #tpu.memory_space<vmem>>, vector<1x16x128xf32>
    %4 = vector.shape_cast %3 : vector<1x16x128xf32> to vector<16x128xf32>
    %c0_3 = arith.constant 0 : index
    %c0_4 = arith.constant 0 : index
    %c0_5 = arith.constant 0 : index
    %5 = vector.load %arg3[%c0_3, %c0_4, %c0_5] : memref<1x1x128xf32, #tpu.memory_space<vmem>>, vector<1x1x128xf32>
    %6 = vector.shape_cast %5 : vector<1x1x128xf32> to vector<1x128xf32>
    %c0_6 = arith.constant 0 : index
    %c0_7 = arith.constant 0 : index
    %c0_8 = arith.constant 0 : index
    %7 = vector.load %arg4[%c0_6, %c0_7, %c0_8] : memref<1x1x128xf32, #tpu.memory_space<vmem>>, vector<1x1x128xf32>
    %8 = vector.shape_cast %7 : vector<1x1x128xf32> to vector<1x128xf32>
    %cst = arith.constant dense<0.000000e+00> : vector<16xf32>
    %9 = vector.multi_reduction <add>, %4, %cst [1] : vector<16x128xf32> to vector<16xf32>
    %10 = vector.shape_cast %9 : vector<16xf32> to vector<16x1xf32>
    %cst_9 = arith.constant 1.280000e+02 : f32
    %11 = vector.broadcast %cst_9 : f32 to vector<16x1xf32>
    %12 = arith.divf %10, %11 : vector<16x1xf32>
    %13 = vector.broadcast %12 : vector<16x1xf32> to vector<16x128xf32>
    %14 = arith.subf %4, %13 : vector<16x128xf32>
    %15 = arith.mulf %14, %14 : vector<16x128xf32>
    %cst_10 = arith.constant dense<0.000000e+00> : vector<16xf32>
    %16 = vector.multi_reduction <add>, %15, %cst_10 [1] : vector<16x128xf32> to vector<16xf32>
    %17 = vector.shape_cast %16 : vector<16xf32> to vector<16x1xf32>
    %cst_11 = arith.constant 1.280000e+02 : f32
    %18 = vector.broadcast %cst_11 : f32 to vector<16x1xf32>
    %19 = arith.divf %17, %18 : vector<16x1xf32>
    %cst_12 = arith.constant 9.99999974E-6 : f32
    %20 = vector.broadcast %cst_12 : f32 to vector<16x1xf32>
    %21 = arith.addf %19, %20 : vector<16x1xf32>
    %22 = math.rsqrt %21 : vector<16x1xf32>
    %23 = vector.broadcast %12 : vector<16x1xf32> to vector<16x128xf32>
    %24 = arith.subf %4, %23 : vector<16x128xf32>
    %25 = vector.broadcast %22 : vector<16x1xf32> to vector<16x128xf32>
    %26 = arith.mulf %24, %25 : vector<16x128xf32>
    %27 = vector.broadcast %6 : vector<1x128xf32> to vector<16x128xf32>
    %28 = arith.mulf %26, %27 : vector<16x128xf32>
    %29 = vector.broadcast %8 : vector<1x128xf32> to vector<16x128xf32>
    %30 = arith.addf %28, %29 : vector<16x128xf32>
    %31 = arith.truncf %30 : vector<16x128xf32> to vector<16x128xbf16>
    %c0_13 = arith.constant 0 : index
    %c0_14 = arith.constant 0 : index
    %c0_15 = arith.constant 0 : index
    %32 = vector.load %arg5[%c0_13, %c0_14, %c0_15] : memref<1x128x384xbf16, #tpu.memory_space<vmem>>, vector<1x128x384xbf16>
    %33 = vector.shape_cast %32 : vector<1x128x384xbf16> to vector<128x384xbf16>
    %cst_16 = arith.constant dense<0.000000e+00> : vector<16x384xf32>
    %34 = tpu.matmul %31, %33, %cst_16 {dimension_numbers = #tpu.dot_dimension_numbers<[1], [0], [0], [1], [0, 0, 1, 1], [], []>} : vector<16x128xbf16>, vector<128x384xbf16>, vector<16x384xf32> -> vector<16x384xf32>
    %c0_17 = arith.constant 0 : index
    %c0_18 = arith.constant 0 : index
    %c0_19 = arith.constant 0 : index
    %35 = vector.load %arg6[%c0_17, %c0_18, %c0_19] : memref<1x1x384xf32, #tpu.memory_space<vmem>>, vector<1x1x384xf32>
    %36 = vector.shape_cast %35 : vector<1x1x384xf32> to vector<1x384xf32>
    %37 = vector.broadcast %36 : vector<1x384xf32> to vector<16x384xf32>
    %38 = arith.addf %34, %37 : vector<16x384xf32>
    %39 = vector.extract_strided_slice %38 {offsets = [0, 0], sizes = [16, 128], strides = [1, 1]} : vector<16x384xf32> to vector<16x128xf32>
    %cst_20 = arith.constant 0.176776692 : f32
    %40 = vector.broadcast %cst_20 : f32 to vector<16x128xf32>
    %41 = arith.mulf %39, %40 : vector<16x128xf32>
    %42 = vector.extract_strided_slice %38 {offsets = [0, 128], sizes = [16, 128], strides = [1, 1]} : vector<16x384xf32> to vector<16x128xf32>
    %43 = vector.extract_strided_slice %38 {offsets = [0, 256], sizes = [16, 128], strides = [1, 1]} : vector<16x384xf32> to vector<16x128xf32>
    %44 = vector.shape_cast %41 : vector<16x128xf32> to vector<16x4x32xf32>
    %45 = tpu.transpose %44, [1, 0, 2] : vector<16x4x32xf32> -> vector<4x16x32xf32>
    %46 = arith.truncf %45 : vector<4x16x32xf32> to vector<4x16x32xbf16>
    %47 = vector.shape_cast %42 : vector<16x128xf32> to vector<16x4x32xf32>
    %48 = tpu.transpose %47, [1, 0, 2] : vector<16x4x32xf32> -> vector<4x16x32xf32>
    %49 = arith.truncf %48 : vector<4x16x32xf32> to vector<4x16x32xbf16>
    %50 = vector.shape_cast %43 : vector<16x128xf32> to vector<16x4x32xf32>
    %51 = tpu.transpose %50, [1, 0, 2] : vector<16x4x32xf32> -> vector<4x16x32xf32>
    %52 = arith.truncf %51 : vector<4x16x32xf32> to vector<4x16x32xbf16>
    "tpu.trace_start"() <{level = 10 : i32, message = "hqd,hkd->hqk"}> : () -> ()
    %cst_21 = arith.constant dense<0.000000e+00> : vector<4x16x16xf32>
    %53 = tpu.matmul %46, %49, %cst_21 {dimension_numbers = #tpu.dot_dimension_numbers<[2], [2], [1], [1], [0, 0, 0, 1, 1, 1], [0], [0]>} : vector<4x16x32xbf16>, vector<4x16x32xbf16>, vector<4x16x16xf32> -> vector<4x16x16xf32>
    "tpu.trace_stop"() : () -> ()
    %54 = tpu.iota {dimensions = array<i32: 0>} : vector<16x16xi32>
    %55 = tpu.iota {dimensions = array<i32: 1>} : vector<16x16xi32>
    %56 = arith.cmpi sle, %55, %54 : vector<16x16xi32>
    %57 = vector.shape_cast %56 : vector<16x16xi1> to vector<1x16x16xi1>
    %58 = vector.shape_cast %57 : vector<1x16x16xi1> to vector<1x16x16xi1>
    %59 = vector.broadcast %58 : vector<1x16x16xi1> to vector<4x16x16xi1>
    %cst_22 = arith.constant -1.000000e+30 : f32
    %60 = vector.broadcast %cst_22 : f32 to vector<4x16x16xf32>
    %61 = arith.select %59, %53, %60 : vector<4x16x16xi1>, vector<4x16x16xf32>
    %cst_23 = arith.constant dense<0xFF800000> : vector<4x16xf32>
    %62 = vector.multi_reduction <maximumf>, %61, %cst_23 [2] : vector<4x16x16xf32> to vector<4x16xf32>
    %63 = vector.shape_cast %62 : vector<4x16xf32> to vector<4x16x1xf32>
    %64 = vector.broadcast %63 : vector<4x16x1xf32> to vector<4x16x16xf32>
    %65 = arith.subf %61, %64 : vector<4x16x16xf32>
    %66 = math.exp %65 : vector<4x16x16xf32>
    %cst_24 = arith.constant dense<0.000000e+00> : vector<4x16xf32>
    %67 = vector.multi_reduction <add>, %66, %cst_24 [2] : vector<4x16x16xf32> to vector<4x16xf32>
    %68 = vector.shape_cast %67 : vector<4x16xf32> to vector<4x16x1xf32>
    %69 = tpu.reciprocal %68 {approx = true} : vector<4x16x1xf32> -> vector<4x16x1xf32>
    %70 = vector.broadcast %69 : vector<4x16x1xf32> to vector<4x16x16xf32>
    %71 = arith.mulf %66, %70 : vector<4x16x16xf32>
    %72 = arith.truncf %71 : vector<4x16x16xf32> to vector<4x16x16xbf16>
    "tpu.trace_start"() <{level = 10 : i32, message = "hqk,hkd->hqd"}> : () -> ()
    %cst_25 = arith.constant dense<0.000000e+00> : vector<4x16x32xf32>
    %73 = tpu.matmul %72, %52, %cst_25 {dimension_numbers = #tpu.dot_dimension_numbers<[2], [1], [1], [2], [0, 0, 0, 1, 1, 2], [0], [0]>} : vector<4x16x16xbf16>, vector<4x16x32xbf16>, vector<4x16x32xf32> -> vector<4x16x32xf32>
    "tpu.trace_stop"() : () -> ()
    %74 = tpu.transpose %73, [1, 0, 2] : vector<4x16x32xf32> -> vector<16x4x32xf32>
    %75 = vector.shape_cast %74 : vector<16x4x32xf32> to vector<16x128xf32>
    %76 = arith.truncf %75 : vector<16x128xf32> to vector<16x128xbf16>
    %c0_26 = arith.constant 0 : index
    %c0_27 = arith.constant 0 : index
    %c0_28 = arith.constant 0 : index
    %77 = vector.load %arg7[%c0_26, %c0_27, %c0_28] : memref<1x128x128xbf16, #tpu.memory_space<vmem>>, vector<1x128x128xbf16>
    %78 = vector.shape_cast %77 : vector<1x128x128xbf16> to vector<128x128xbf16>
    %cst_29 = arith.constant dense<0.000000e+00> : vector<16x128xf32>
    %79 = tpu.matmul %76, %78, %cst_29 {dimension_numbers = #tpu.dot_dimension_numbers<[1], [0], [0], [1], [0, 0, 1, 1], [], []>} : vector<16x128xbf16>, vector<128x128xbf16>, vector<16x128xf32> -> vector<16x128xf32>
    %c0_30 = arith.constant 0 : index
    %c0_31 = arith.constant 0 : index
    %c0_32 = arith.constant 0 : index
    %80 = vector.load %arg8[%c0_30, %c0_31, %c0_32] : memref<1x1x128xf32, #tpu.memory_space<vmem>>, vector<1x1x128xf32>
    %81 = vector.shape_cast %80 : vector<1x1x128xf32> to vector<1x128xf32>
    %82 = vector.broadcast %81 : vector<1x128xf32> to vector<16x128xf32>
    %83 = arith.addf %79, %82 : vector<16x128xf32>
    %84 = arith.addf %4, %83 : vector<16x128xf32>
    %c0_33 = arith.constant 0 : index
    %c0_34 = arith.constant 0 : index
    %c0_35 = arith.constant 0 : index
    %85 = vector.load %arg9[%c0_33, %c0_34, %c0_35] : memref<1x1x128xf32, #tpu.memory_space<vmem>>, vector<1x1x128xf32>
    %86 = vector.shape_cast %85 : vector<1x1x128xf32> to vector<1x128xf32>
    %c0_36 = arith.constant 0 : index
    %c0_37 = arith.constant 0 : index
    %c0_38 = arith.constant 0 : index
    %87 = vector.load %arg10[%c0_36, %c0_37, %c0_38] : memref<1x1x128xf32, #tpu.memory_space<vmem>>, vector<1x1x128xf32>
    %88 = vector.shape_cast %87 : vector<1x1x128xf32> to vector<1x128xf32>
    %cst_39 = arith.constant dense<0.000000e+00> : vector<16xf32>
    %89 = vector.multi_reduction <add>, %84, %cst_39 [1] : vector<16x128xf32> to vector<16xf32>
    %90 = vector.shape_cast %89 : vector<16xf32> to vector<16x1xf32>
    %cst_40 = arith.constant 1.280000e+02 : f32
    %91 = vector.broadcast %cst_40 : f32 to vector<16x1xf32>
    %92 = arith.divf %90, %91 : vector<16x1xf32>
    %93 = vector.broadcast %92 : vector<16x1xf32> to vector<16x128xf32>
    %94 = arith.subf %84, %93 : vector<16x128xf32>
    %95 = arith.mulf %94, %94 : vector<16x128xf32>
    %cst_41 = arith.constant dense<0.000000e+00> : vector<16xf32>
    %96 = vector.multi_reduction <add>, %95, %cst_41 [1] : vector<16x128xf32> to vector<16xf32>
    %97 = vector.shape_cast %96 : vector<16xf32> to vector<16x1xf32>
    %cst_42 = arith.constant 1.280000e+02 : f32
    %98 = vector.broadcast %cst_42 : f32 to vector<16x1xf32>
    %99 = arith.divf %97, %98 : vector<16x1xf32>
    %cst_43 = arith.constant 9.99999974E-6 : f32
    %100 = vector.broadcast %cst_43 : f32 to vector<16x1xf32>
    %101 = arith.addf %99, %100 : vector<16x1xf32>
    %102 = math.rsqrt %101 : vector<16x1xf32>
    %103 = vector.broadcast %92 : vector<16x1xf32> to vector<16x128xf32>
    %104 = arith.subf %84, %103 : vector<16x128xf32>
    %105 = vector.broadcast %102 : vector<16x1xf32> to vector<16x128xf32>
    %106 = arith.mulf %104, %105 : vector<16x128xf32>
    %107 = vector.broadcast %86 : vector<1x128xf32> to vector<16x128xf32>
    %108 = arith.mulf %106, %107 : vector<16x128xf32>
    %109 = vector.broadcast %88 : vector<1x128xf32> to vector<16x128xf32>
    %110 = arith.addf %108, %109 : vector<16x128xf32>
    %111 = arith.truncf %110 : vector<16x128xf32> to vector<16x128xbf16>
    %c0_44 = arith.constant 0 : index
    %c0_45 = arith.constant 0 : index
    %c0_46 = arith.constant 0 : index
    %112 = vector.load %arg11[%c0_44, %c0_45, %c0_46] : memref<1x128x512xbf16, #tpu.memory_space<vmem>>, vector<1x128x512xbf16>
    %113 = vector.shape_cast %112 : vector<1x128x512xbf16> to vector<128x512xbf16>
    %cst_47 = arith.constant dense<0.000000e+00> : vector<16x512xf32>
    %114 = tpu.matmul %111, %113, %cst_47 {dimension_numbers = #tpu.dot_dimension_numbers<[1], [0], [0], [1], [0, 0, 1, 1], [], []>} : vector<16x128xbf16>, vector<128x512xbf16>, vector<16x512xf32> -> vector<16x512xf32>
    %c0_48 = arith.constant 0 : index
    %c0_49 = arith.constant 0 : index
    %c0_50 = arith.constant 0 : index
    %115 = vector.load %arg12[%c0_48, %c0_49, %c0_50] : memref<1x1x512xf32, #tpu.memory_space<vmem>>, vector<1x1x512xf32>
    %116 = vector.shape_cast %115 : vector<1x1x512xf32> to vector<1x512xf32>
    %117 = vector.broadcast %116 : vector<1x512xf32> to vector<16x512xf32>
    %118 = arith.addf %114, %117 : vector<16x512xf32>
    %cst_51 = arith.constant 5.000000e-01 : f32
    %119 = vector.broadcast %cst_51 : f32 to vector<16x512xf32>
    %120 = arith.mulf %119, %118 : vector<16x512xf32>
    %cst_52 = arith.constant 4.471500e-02 : f32
    %121 = vector.broadcast %cst_52 : f32 to vector<16x512xf32>
    %122 = arith.mulf %121, %118 : vector<16x512xf32>
    %123 = arith.mulf %122, %118 : vector<16x512xf32>
    %124 = arith.mulf %123, %118 : vector<16x512xf32>
    %125 = arith.addf %118, %124 : vector<16x512xf32>
    %cst_53 = arith.constant 0.797884583 : f32
    %126 = vector.broadcast %cst_53 : f32 to vector<16x512xf32>
    %127 = arith.mulf %126, %125 : vector<16x512xf32>
    %128 = math.tanh %127 : vector<16x512xf32>
    %cst_54 = arith.constant 1.000000e+00 : f32
    %129 = vector.broadcast %cst_54 : f32 to vector<16x512xf32>
    %130 = arith.addf %129, %128 : vector<16x512xf32>
    %131 = arith.mulf %120, %130 : vector<16x512xf32>
    %132 = arith.truncf %131 : vector<16x512xf32> to vector<16x512xbf16>
    %c0_55 = arith.constant 0 : index
    %c0_56 = arith.constant 0 : index
    %c0_57 = arith.constant 0 : index
    %133 = vector.load %arg13[%c0_55, %c0_56, %c0_57] : memref<1x512x128xbf16, #tpu.memory_space<vmem>>, vector<1x512x128xbf16>
    %134 = vector.shape_cast %133 : vector<1x512x128xbf16> to vector<512x128xbf16>
    %cst_58 = arith.constant dense<0.000000e+00> : vector<16x128xf32>
    %135 = tpu.matmul %132, %134, %cst_58 {dimension_numbers = #tpu.dot_dimension_numbers<[1], [0], [0], [1], [0, 0, 1, 1], [], []>} : vector<16x512xbf16>, vector<512x128xbf16>, vector<16x128xf32> -> vector<16x128xf32>
    %c0_59 = arith.constant 0 : index
    %c0_60 = arith.constant 0 : index
    %c0_61 = arith.constant 0 : index
    %136 = vector.load %arg14[%c0_59, %c0_60, %c0_61] : memref<1x1x128xf32, #tpu.memory_space<vmem>>, vector<1x1x128xf32>
    %137 = vector.shape_cast %136 : vector<1x1x128xf32> to vector<1x128xf32>
    %138 = vector.broadcast %137 : vector<1x128xf32> to vector<16x128xf32>
    %139 = arith.addf %135, %138 : vector<16x128xf32>
    %140 = arith.addf %84, %139 : vector<16x128xf32>
    %c0_62 = arith.constant 0 : index
    %c0_63 = arith.constant 0 : index
    %c0_64 = arith.constant 0 : index
    %141 = vector.load %arg15[%c0_62, %c0_63, %c0_64] : memref<1x16x128xf32, #tpu.memory_space<vmem>>, vector<1x16x128xf32>
    %142 = vector.shape_cast %141 : vector<1x16x128xf32> to vector<16x128xf32>
    %143 = vector.shape_cast %140 : vector<16x128xf32> to vector<1x16x128xf32>
    tpu.vector_store %arg15[%c0_62, %c0_63, %c0_64], %143 {strides = array<i32>} : memref<1x16x128xf32, #tpu.memory_space<vmem>>, vector<1x16x128xf32>,
    return
  }
  func.func @transform_0(%arg0: i32, %arg1: i32) -> (i32, i32, i32) {
    %c0_i32 = arith.constant 0 : i32
    %c0_i32_0 = arith.constant 0 : i32
    %c0_i32_1 = arith.constant 0 : i32
    return %arg0, %c0_i32, %c0_i32_0 : i32, i32, i32
  }
  func.func @transform_1(%arg0: i32, %arg1: i32) -> (i32, i32, i32) {
    %c0_i32 = arith.constant 0 : i32
    %c0_i32_0 = arith.constant 0 : i32
    %c0_i32_1 = arith.constant 0 : i32
    return %arg1, %c0_i32, %c0_i32_0 : i32, i32, i32
  }
  func.func @transform_2(%arg0: i32, %arg1: i32) -> (i32, i32, i32) {
    %c0_i32 = arith.constant 0 : i32
    %c0_i32_0 = arith.constant 0 : i32
    %c0_i32_1 = arith.constant 0 : i32
    return %arg1, %c0_i32, %c0_i32_0 : i32, i32, i32
  }
  func.func @transform_3(%arg0: i32, %arg1: i32) -> (i32, i32, i32) {
    %c0_i32 = arith.constant 0 : i32
    %c0_i32_0 = arith.constant 0 : i32
    %c0_i32_1 = arith.constant 0 : i32
    return %arg1, %c0_i32, %c0_i32_0 : i32, i32, i32
  }
  func.func @transform_4(%arg0: i32, %arg1: i32) -> (i32, i32, i32) {
    %c0_i32 = arith.constant 0 : i32
    %c0_i32_0 = arith.constant 0 : i32
    %c0_i32_1 = arith.constant 0 : i32
    return %arg1, %c0_i32, %c0_i32_0 : i32, i32, i32
  }
  func.func @transform_5(%arg0: i32, %arg1: i32) -> (i32, i32, i32) {
    %c0_i32 = arith.constant 0 : i32
    %c0_i32_0 = arith.constant 0 : i32
    %c0_i32_1 = arith.constant 0 : i32
    return %arg1, %c0_i32, %c0_i32_0 : i32, i32, i32
  }
  func.func @transform_6(%arg0: i32, %arg1: i32) -> (i32, i32, i32) {
    %c0_i32 = arith.constant 0 : i32
    %c0_i32_0 = arith.constant 0 : i32
    %c0_i32_1 = arith.constant 0 : i32
    return %arg1, %c0_i32, %c0_i32_0 : i32, i32, i32
  }
  func.func @transform_7(%arg0: i32, %arg1: i32) -> (i32, i32, i32) {
    %c0_i32 = arith.constant 0 : i32
    %c0_i32_0 = arith.constant 0 : i32
    %c0_i32_1 = arith.constant 0 : i32
    return %arg1, %c0_i32, %c0_i32_0 : i32, i32, i32
  }
  func.func @transform_8(%arg0: i32, %arg1: i32) -> (i32, i32, i32) {
    %c0_i32 = arith.constant 0 : i32
    %c0_i32_0 = arith.constant 0 : i32
    %c0_i32_1 = arith.constant 0 : i32
    return %arg1, %c0_i32, %c0_i32_0 : i32, i32, i32
  }
  func.func @transform_9(%arg0: i32, %arg1: i32) -> (i32, i32, i32) {
    %c0_i32 = arith.constant 0 : i32
    %c0_i32_0 = arith.constant 0 : i32
    %c0_i32_1 = arith.constant 0 : i32
    return %arg1, %c0_i32, %c0_i32_0 : i32, i32, i32
  }
  func.func @transform_10(%arg0: i32, %arg1: i32) -> (i32, i32, i32) {
    %c0_i32 = arith.constant 0 : i32
    %c0_i32_0 = arith.constant 0 : i32
    %c0_i32_1 = arith.constant 0 : i32
    return %arg1, %c0_i32, %c0_i32_0 : i32, i32, i32
  }
  func.func @transform_11(%arg0: i32, %arg1: i32) -> (i32, i32, i32) {
    %c0_i32 = arith.constant 0 : i32
    %c0_i32_0 = arith.constant 0 : i32
    %c0_i32_1 = arith.constant 0 : i32
    return %arg1, %c0_i32, %c0_i32_0 : i32, i32, i32
  }
  func.func @transform_12(%arg0: i32, %arg1: i32) -> (i32, i32, i32) {
    %c0_i32 = arith.constant 0 : i32
    %c0_i32_0 = arith.constant 0 : i32
    %c0_i32_1 = arith.constant 0 : i32
    return %arg1, %c0_i32, %c0_i32_0 : i32, i32, i32
  }
  func.func @transform_13(%arg0: i32, %arg1: i32) -> (i32, i32, i32) {
    %c0_i32 = arith.constant 0 : i32
    %c0_i32_0 = arith.constant 0 : i32
    %c0_i32_1 = arith.constant 0 : i32
    return %arg0, %c0_i32, %c0_i32_0 : i32, i32, i32
  }
}

</mosaic_0001>

<bundles_post_ra>
// kernel: lm_model_pallas.1
= control target key start
LH: loop header
LB: loop body
LE: loop exit
PB: predicated region body
PF: predicated region fallthrough
CT: control target
= control target key end

     0   :  { %s6287_s0 = inlined_call_operand.hbm [shape: f32[2,16,128], index: 0, kind: input, shape index: {}]   ;;  %s6288_s1 = inlined_call_operand.vmem [shape: f32[2,1,128], index: 1, kind: input, shape index: {}]   ;;  %s6289_s2 = inlined_call_operand.vmem [shape: f32[2,1,128], index: 2, kind: input, shape index: {}]   ;;  %s6290_s3 = inlined_call_operand.hbm [shape: bf16[2,128,384], index: 3, kind: input, shape index: {}]   ;;  %s6291_s4 = inlined_call_operand.vmem [shape: f32[2,1,384], index: 4, kind: input, shape index: {}]   ;;  %s6292_s5 = inlined_call_operand.hbm [shape: bf16[2,128,128], index: 5, kind: input, shape index: {}]   ;;  %s6293_s6 = inlined_call_operand.hbm [shape: f32[2,1,128], index: 6, kind: input, shape index: {}]   ;;  %s6294_s7 = inlined_call_operand.vmem [shape: f32[2,1,128], index: 7, kind: input, shape index: {}]   ;;  %s6295_s8 = inlined_call_operand.vmem [shape: f32[2,1,128], index: 8, kind: input, shape index: {}]   ;;  %s6296_s9 = inlined_call_operand.hbm [shape: bf16[2,128,512], index: 9, kind: input, shape index: {}]   ;;  %s6297_s10 = inlined_call_operand.hbm [shape: f32[2,1,512], index: 10, kind: input, shape index: {}]   ;;  %s6298_s11 = inlined_call_operand.hbm [shape: bf16[2,512,128], index: 11, kind: input, shape index: {}]   ;;  %s6299_s12 = inlined_call_operand.hbm [shape: f32[2,1,128], index: 12, kind: input, shape index: {}]   ;;  %s6300_s13 = inlined_call_operand.hbm [shape: f32[2,16,128], index: 13, kind: output, shape index: {}]  }
   0x1   :  { %6331 = sst [smem:[#allocation39_spill]] %s6287_s0 }
   0x2   :  { %6332 = sst [smem:[#allocation40_spill]] %s6288_s1 }
   0x3   :  { %6333 = sst [smem:[#allocation41_spill]] %s6289_s2 }
   0x4   :  { %6334 = sst [smem:[#allocation42_spill]] %s6290_s3 }
   0x5   :  { %6335 = sst [smem:[#allocation43_spill]] %s6291_s4 }
   0x6   :  { %6336 = sst [smem:[#allocation44_spill]] %s6292_s5 }
   0x7   :  { %6337 = sst [smem:[#allocation45_spill]] %s6293_s6 }
   0x8   :  { %6338 = sst [smem:[#allocation46_spill]] %s6294_s7 }
   0x9   :  { %6339 = sst [smem:[#allocation47_spill]] %s6295_s8 }
   0xa   :  { %6340 = sst [smem:[#allocation48_spill]] %s6296_s9 }
   0xb   :  { %6341 = sst [smem:[#allocation49_spill]] %s6297_s10 }
   0xc   :  { %6342 = sst [smem:[#allocation50_spill]] %s6298_s11 }
   0xd   :  { %6343 = sst [smem:[#allocation51_spill]] %s6299_s12 }
   0xe   :  { %6344 = sst [smem:[#allocation52_spill]] %s6300_s13 }
   0xf   :  { %18 = vsyncpa [#allocation3], 0 }
  0x10   :  { %20 = vsyncpa [#allocation3 + $0x1], 0 }
  0x11   :  { %21 = vsyncpa [#allocation6], 0 }
  0x12   :  { %23 = vsyncpa [#allocation6 + $0x1], 0 }
  0x13   :  { %24 = vsyncpa [#allocation9], 0 }
  0x14   :  { %26 = vsyncpa [#allocation9 + $0x1], 0 }
  0x15   :  { %27 = vsyncpa [#allocation12], 0 }
  0x16   :  { %29 = vsyncpa [#allocation12 + $0x1], 0 }
  0x17   :  { %30 = vsyncpa [#allocation15], 0 }
  0x18   :  { %32 = vsyncpa [#allocation15 + $0x1], 0 }
  0x19   :  { %33 = vsyncpa [#allocation4], 0 }
  0x1a   :  { %35 = vsyncpa [#allocation4 + $0x1], 0  ;;  %s5121_s25 = smov 0   ;;  %s5123_s26 = smov 0  }
  0x1b   :  { %s5125_s27 = smov 0   ;;  %s5127_s28 = smov 0  }
  0x1c   :  { %s5129_s29 = smov 0   ;;  %s5131_s30 = smov 0  }
  0x1d   :  { %s5133_s14 = smov 0   ;;  %s5135_s15 = smov 0  }
  0x1e   :  { %s5137_s16 = smov 0   ;;  %s5139_s17 = smov 0  }
  0x1f   :  { %s5141_s18 = smov 0  }
  0x20 LB: > { %6345 = sst [smem:[#allocation23_spill]] %s4986_s26  ;;  %p6303_p0 = scmp.eq.s32.totalorder %s5022_s18, 0  ;;  %s5022_s18 = sphi %s5141_s18, %s41_s18   ;;  %s5018_s17 = sphi %s5139_s17, %s6425_s17   ;;  %s5014_s16 = sphi %s5137_s16, %s6424_s16   ;;  %s5010_s15 = sphi %s5135_s15, %s6423_s15   ;;  %s5006_s14 = sphi %s5133_s14, %s6422_s14   ;;  %s5002_s30 = sphi %s5131_s30, %s6421_s30   ;;  %s4998_s29 = sphi %s5129_s29, %s6420_s29   ;;  %s4994_s28 = sphi %s5127_s28, %s6419_s28   ;;  %s4990_s27 = sphi %s5125_s27, %s6418_s27   ;;  %s4986_s26 = sphi %s5123_s26, %s6417_s26   ;;  %s4982_s25 = sphi %s5121_s25, %s6416_s25  }
  0x21   : > { %6346 = sst [smem:[#allocation24_spill]] %s4990_s27  ;;  %p145_p1 = scmp.ne.s32.totalorder %s4990_s27, %s4986_s26 }
  0x22   : > { %6347 = sst [smem:[#allocation25_spill]] %s4994_s28  ;;  %p6302_p2 = scmp.lt.s32.totalorder %s5022_s18, 4 }
  0x23   : > { %6348 = sst [smem:[#allocation26_spill]] %s4998_s29  ;;  %s5182_s20 = sand.u32 1, %s5022_s18  }
  0x24   : > { %6349 = sst [smem:[#allocation27_spill]] %s5002_s30  ;;  %p147_p3 = por %p145_p1, %p6303_p0 }
  0x25   : > { %6350 = sst [smem:[#allocation28_spill]] %s5006_s14  ;;  %s5187_s21 = sand.u32 1, %s4990_s27  }
  0x26   : > { %6351 = sst [smem:[#allocation29_spill]] %s5010_s15  ;;  %s4293_s22 = smul.u32 3072, %s5014_s16 }
  0x27   : > { %6352 = sst [smem:[#allocation30_spill]] %s5014_s16  ;;  %s4292_s23 = smul.u32 192, %s5187_s21 }
  0x28   : > { %6353 = sst [smem:[#allocation31_spill]] %s5018_s17  ;;  %p5193_p4 = pnand %p6302_p2, %p147_p3 }
  0x29   : > { %6354 = sst [smem:[#allocation32_spill]] %s5022_s18  ;;  %s472_s4 = scalar_lea.vmem [#allocation5], %s4292_s23 }
  0x2a   : > { %s6355_s24 = scalar_select %p5193_p4, 1, 0 }
  0x2b   : > { %s6356_s3 = sld [smem:[#allocation42_spill]]  ;;  %s479_s8 = sshll.u32 %s472_s4, 4  ;;  %s5202_s8 = int_to_ptr.vmem [resolvable:$true] %s479_s8 }
  0x2c   : > { %p5210_p7 = pneg %p5193_p4 }
  0x31   : > { %s5200_s19 = scalar_lea.hbm %s6356_s3, %s4293_s22  ;;  %s4649_s22 = scalar_lea.hbm %s6356_s3, 6144 }
  0x32   : > { %s4644_s2 = scalar_lea.hbm %s5200_s19, 3072  ;;  %p4650_p10 = scmp.lt.u32.totalorder %s5200_s19, %s6356_s3 }
  0x33   : > { %p4645_p6 = scmp.ne.s32.totalorder %s5200_s19, %s4644_s2  ;;  %p4651_p11 = scmp.lt.u32.totalorder %s4649_s22, %s4644_s2 }
  0x34   : > { %p4653_p13 = scmp.lt.u32.totalorder %s4644_s2, %s5200_s19 }
  0x35   : > { %p4647_p8 = pnand %p5210_p7, %p4645_p6  ;;  %p4652_p12 = por %p4651_p11, %p4650_p10 }
  0x37   : > { %p4648_p9 = pneg %p4647_p8  ;;  %p4654_p1 = por %p4653_p13, %p4652_p12 }
  0x39   : > { %p4655_p3 = pnand %p4654_p1, %p4648_p9 }
  0x3b   : > { %4658 = shalt.err (!%p4655_p3)
}
  0x3c   : > { %s4659_s7 = scalar_lea.vmem %s5202_s8, 3072  ;;  %s5024_s13 = smov [#allocation5]  }
  0x3d   : > { %p4660_p6 = scmp.ne.s32.totalorder %s5202_s8, %s4659_s7  ;;  %s4664_s15 = sshll.u32 %s5024_s13, 4  ;;  %s4665_s15 = int_to_ptr.vmem [resolvable:$false] %s4664_s15 }
  0x3e   : > { %s4666_s4 = scalar_lea.vmem %s4665_s15, 6144  ;;  %p4667_p0 = scmp.lt.s32.totalorder %s5202_s8, %s4665_s15 }
  0x3f   : > { %p4662_p8 = pnand %p4660_p6, %p5210_p7  ;;  %p4668_p5 = scmp.lt.s32.totalorder %s4666_s4, %s4659_s7 }
  0x41   : > { %p4663_p2 = pneg %p4662_p8  ;;  %p4669_p10 = por %p4668_p5, %p4667_p0 }
  0x43   : > { %p4670_p11 = pnand %p4669_p10, %p4663_p2 }
  0x45   : > { %4673 = shalt.err (!%p4670_p11)
}
  0x46   : > { %s5025_s2 = smov 192   ;;  %s5026_s22 = smov 12  }
  0x47   : > { %s6358_s23 = scalar_lea.sflag [#allocation6], %s5182_s20  ;;  %p622_p0 = scmp.lt.s32.totalorder %s5022_s18, 5 }
  0x48   : > { %4320 = dma.hbm_to_vmem [thread:$0]  (!%p5193_p4), %s5200_s19, 3072, %s5202_s8, %s6358_s23, %s5025_s2, %s5025_s2, %s5026_s22  }
  0x49   : > { %s6306_s7 = sshll.u32 %s5014_s16, 4  ;;  %p6359_p2 = scmp.ge.s32.totalorder %s5022_s18, 1 }
  0x4a   : > { %s6361_s6 = sld [smem:[#allocation45_spill]]  ;;  %s520_s14 = scalar_lea.vmem [#allocation8], %s5187_s21 }
  0x4b   : > { %p5239_p5 = pnand %p6359_p2, %p622_p0  ;;  %s527_s12 = sshll.u32 %s520_s14, 4  ;;  %s5251_s12 = int_to_ptr.vmem [resolvable:$true] %s527_s12 }
  0x4c   : > { %s3974_s8 = sshll.u32 %s5187_s21, 2  ;;  %s6307_s19 = scalar_lea.sflag [#allocation9], %s5182_s20 }
  0x4d   : > { %s6360_s13 = scalar_select %p5239_p5, 1, 0 }
  0x50   : > { %s5248_s3 = scalar_lea.hbm %s6361_s6, %s6306_s7  ;;  %s4679_s15 = scalar_lea.hbm %s6361_s6, 32 }
  0x51   : > { %s4674_s2 = scalar_lea.hbm %s5248_s3, 16  ;;  %p4680_p1 = scmp.lt.u32.totalorder %s5248_s3, %s6361_s6 }
  0x52   : > { %p4675_p9 = scmp.ne.s32.totalorder %s5248_s3, %s4674_s2  ;;  %p4681_p3 = scmp.lt.u32.totalorder %s4679_s15, %s4674_s2 }
  0x53   : > { %p4683_p8 = scmp.lt.u32.totalorder %s4674_s2, %s5248_s3 }
  0x54   : > { %p4677_p12 = pnand %p4675_p9, %p5210_p7  ;;  %p4682_p6 = por %p4681_p3, %p4680_p1 }
  0x56   : > { %p4678_p13 = pneg %p4677_p12  ;;  %p4684_p10 = por %p4683_p8, %p4682_p6 }
  0x58   : > { %p4685_p11 = pnand %p4684_p10, %p4678_p13 }
  0x5a   : > { %4688 = shalt.err (!%p4685_p11)
}
  0x5b   : > { %s4689_s14 = scalar_lea.vmem %s5251_s12, 16  ;;  %s5027_s22 = smov [#allocation8]  }
  0x5c   : > { %p4690_p0 = scmp.ne.s32.totalorder %s5251_s12, %s4689_s14  ;;  %s4694_s23 = sshll.u32 %s5027_s22, 4  ;;  %s4695_s23 = int_to_ptr.vmem [resolvable:$false] %s4694_s23 }
  0x5d   : > { %s4696_s7 = scalar_lea.vmem %s4695_s23, 32  ;;  %p4697_p12 = scmp.lt.s32.totalorder %s5251_s12, %s4695_s23 }
  0x5e   : > { %p4692_p2 = pnand %p4690_p0, %p5210_p7  ;;  %p4698_p5 = scmp.lt.s32.totalorder %s4696_s7, %s4689_s14 }
  0x60   : > { %p4693_p9 = pneg %p4692_p2  ;;  %p4699_p1 = por %p4698_p5, %p4697_p12 }
  0x62   : > { %p4700_p3 = pnand %p4699_p1, %p4693_p9 }
  0x64   : > { %4703 = shalt.err (!%p4700_p3)
}
  0x65   : > { %4326 = dma.hbm_to_vmem [thread:$0]  (!%p5193_p4), %s5248_s3, 16, %s5251_s12, %s6307_s19  }
  0x66   : > { %s4123_s2 = sshll.u32 %s5014_s16, 6  ;;  %s6362_s10 = sld [smem:[#allocation49_spill]] }
  0x67   : > { %s571_s14 = scalar_lea.vmem [#allocation11], %s3974_s8  ;;  %s6310_s7 = scalar_lea.sflag [#allocation12], %s5182_s20 }
  0x68   : > { %s579_s23 = sshll.u32 %s571_s14, 4  ;;  %s580_s23 = int_to_ptr.vmem [resolvable:$true] %s579_s23 }
  0x6c   : > { %s5282_s22 = scalar_lea.hbm %s6362_s10, %s4123_s2  ;;  %s4709_s15 = scalar_lea.hbm %s6362_s10, 128 }
  0x6d   : > { %s4704_s6 = scalar_lea.hbm %s5282_s22, 64  ;;  %p4710_p8 = scmp.lt.u32.totalorder %s5282_s22, %s6362_s10 }
  0x6e   : > { %p4705_p5 = scmp.ne.s32.totalorder %s5282_s22, %s4704_s6  ;;  %p4711_p10 = scmp.lt.u32.totalorder %s4709_s15, %s4704_s6 }
  0x6f   : > { %p4713_p0 = scmp.lt.u32.totalorder %s4704_s6, %s5282_s22 }
  0x70   : > { %p4707_p13 = pnand %p4705_p5, %p5210_p7  ;;  %p4712_p11 = por %p4711_p10, %p4710_p8 }
  0x72   : > { %p4708_p6 = pneg %p4707_p13  ;;  %p4714_p2 = por %p4713_p0, %p4712_p11 }
  0x74   : > { %p4715_p9 = pnand %p4714_p2, %p4708_p6 }
  0x76   : > { %4718 = shalt.err (!%p4715_p9)
}
  0x77   : > { %s4719_s8 = scalar_lea.vmem %s580_s23, 64  ;;  %s5028_s14 = smov [#allocation11]  }
  0x78   : > { %p4720_p12 = scmp.ne.s32.totalorder %s580_s23, %s4719_s8  ;;  %s4724_s19 = sshll.u32 %s5028_s14, 4  ;;  %s4725_s19 = int_to_ptr.vmem [resolvable:$false] %s4724_s19 }
  0x79   : > { %s4726_s3 = scalar_lea.vmem %s4725_s19, 128  ;;  %p4727_p5 = scmp.lt.s32.totalorder %s580_s23, %s4725_s19 }
  0x7a   : > { %p4722_p1 = pnand %p4720_p12, %p5210_p7  ;;  %p4728_p13 = scmp.lt.s32.totalorder %s4726_s3, %s4719_s8 }
  0x7c   : > { %p4723_p3 = pneg %p4722_p1  ;;  %p4729_p4 = por %p4728_p13, %p4727_p5 }
  0x7e   : > { %p4730_p8 = pnand %p4729_p4, %p4723_p3 }
  0x80   : > { %4733 = shalt.err (!%p4730_p8)
}
  0x81   : > { %p6363_p10 = scmp.ne.s32.totalorder %s6355_s24, 0  ;;  %s5307_s6 = sadd.s32 4294967295, %s5022_s18  }
  0x82   : > { %s3960_s19 = sadd.s32 4294967294, %s5022_s18   ;;  %s50_s12 = sadd.s32 1, %s5014_s16 }
  0x83   : > { %4332 = dma.hbm_to_vmem [thread:$0]  (!%p6363_p10), %s5282_s22, 64, %s580_s23, %s6310_s7  }
  0x84   : > { %p51_p4 = scmp.ge.s32.totalorder %s50_s12, 2  ;;  %s53_s15 = sadd.s32 1, %s5018_s17 }
  0x85   : > { %s60_s2 = sadd.s32 1, %s5002_s30  ;;  %p67_p6 = scmp.ne.s32.totalorder %s5002_s30, %s4998_s29 }
  0x86   : > { %s6427_s12 = smov (%p51_p4, %s50_s12), 0  ;;  %s6429_s15 = smov (!%p51_p4, %s53_s15), %s5018_s17 }
  0x87   : > { %6364 = sst [smem:[#allocation33_spill]] %s6427_s12  ;;  %p6365_p11 = scmp.eq.s32.totalorder %s5022_s18, 0 }
  0x88   : > { %p73_p2 = scmp.ne.s32.totalorder %s4998_s29, %s4994_s28  ;;  %p55_p9 = scmp.ge.s32.totalorder %s6429_s15, 2 }
  0x89   : > { %p5323_p0 = por %p6365_p11, %p67_p6  ;;  %p74_p12 = scmp.eq.s32.totalorder %s5307_s6, 0 }
  0x8a   : > { %s135_s23 = ssub.s32 %s5014_s16, %s6427_s12  ;;  %p151_p1 = scmp.ne.s32.totalorder %s4986_s26, %s4982_s25 }
  0x8b   : > { %s6431_s15 = smov (%p55_p9, %s6429_s15), 0  ;;  %p5339_p3 = por %p74_p12, %p73_p2 }
  0x8c   : > { %6367 = sst [smem:[#allocation34_spill]] %s6431_s15  ;;  %p136_p5 = scmp.eq.s32.totalorder %s135_s23, 0 }
  0x8d   : > { %s6368_s4 = scalar_select %p5339_p3, 1, 0 }
  0x8e   : > { %s57_s8 = ssub.s32 %s5018_s17, %s6431_s15  ;;  %p5345_p13 = por %p151_p1, %p74_p12 }
  0x8f   : > { %p58_p8 = scmp.eq.s32.totalorder %s57_s8, 0  ;;  %p409_p4 = scmp.eq.s32.totalorder %s5307_s6, 3 }
  0x90   : > { %s6369_s14 = scalar_select %p5345_p13, 1, 0 }
  0x91   : > { %s6371_s25 = sadd.s32 1, %s4990_s27  ;;  %p5361_p11 = por %p409_p4, %p67_p6 }
  0x92   : > { %6370 = sst [smem:[#allocation35_spill]] %s6369_s14  ;;  %p415_p9 = scmp.eq.s32.totalorder %s3960_s19, 3 }
  0x93   : > { %s5353_s3 = scalar_select %p136_p5, %s4990_s27, %s6371_s25  }
  0x94   : > { %s5356_s7 = scalar_select %p58_p8, %s5002_s30, %s60_s2  }
  0x95   : > { %6372 = sst [smem:[#allocation36_spill]] %s5353_s3  ;;  %s435_s23 = sand.u32 1, %s5002_s30  }
  0x96   : > { %6373 = sst [smem:[#allocation37_spill]] %s5356_s7  ;;  %s4120_s15 = sshll.u32 %s5018_s17, 8 }
  0x97   : > { %s6374_s10 = scalar_select %p5361_p11, 1, 0 }
  0x98   : > { %p5370_p12 = por %p415_p9, %p73_p2  ;;  %s3963_s8 = sshll.u32 %s435_s23, 4 }
  0x99   : > { %s6377_s0 = sld [smem:[#allocation39_spill]]  ;;  %p6378_p1 = scmp.lt.s32.totalorder %s5022_s18, 4 }
  0x9a   : > { %s6375_s12 = scalar_select %p5370_p12, 1, 0 }
  0x9b   : > { %p5383_p6 = pnand %p6378_p1, %p5323_p0  ;;  %s439_s2 = scalar_lea.vmem [#allocation2], %s3963_s8 }
  0x9c   : > { %6376 = sst [smem:[#allocation38_spill]] %s6375_s12  ;;  %s446_s17 = sshll.u32 %s439_s2, 4  ;;  %s5387_s17 = int_to_ptr.vmem [resolvable:$true] %s446_s17 }
  0x9d   : > { %s3967_s7 = sshll.u32 %s5187_s21, 6  ;;  %s5390_s26 = scalar_lea.sflag [#allocation3], %s435_s23 }
  0x9e   : > { %p4736_p5 = pneg %p5383_p6 }
  0x9f   : > { %s5377_s25 = scalar_lea.hbm %s6377_s0, %s4120_s15  ;;  %s4739_s30 = scalar_lea.hbm %s6377_s0, 512 }
  0xa0   : > { %s4734_s15 = scalar_lea.hbm %s5377_s25, 256  ;;  %p4740_p4 = scmp.lt.u32.totalorder %s5377_s25, %s6377_s0 }
  0xa1   : > { %p4735_p2 = scmp.ne.s32.totalorder %s5377_s25, %s4734_s15  ;;  %p4741_p9 = scmp.lt.u32.totalorder %s4739_s30, %s4734_s15 }
  0xa2   : > { %p4743_p12 = scmp.lt.u32.totalorder %s4734_s15, %s5377_s25 }
  0xa3   : > { %p4737_p8 = pnand %p4736_p5, %p4735_p2  ;;  %p4742_p1 = por %p4741_p9, %p4740_p4 }
  0xa5   : > { %p4738_p0 = pneg %p4737_p8  ;;  %p4744_p11 = por %p4743_p12, %p4742_p1 }
  0xa7   : > { %p4745_p13 = pnand %p4744_p11, %p4738_p0 }
  0xa9   : > { %4748 = shalt.err (!%p4745_p13)
}
  0xaa   : > { %s4749_s23 = scalar_lea.vmem %s5387_s17, 256  ;;  %s5029_s2 = smov [#allocation2]  }
  0xab   : > { %p4750_p2 = scmp.ne.s32.totalorder %s5387_s17, %s4749_s23  ;;  %s4754_s22 = sshll.u32 %s5029_s2, 4  ;;  %s4755_s22 = int_to_ptr.vmem [resolvable:$false] %s4754_s22 }
  0xac   : > { %s4756_s3 = scalar_lea.vmem %s4755_s22, 512  ;;  %p4757_p10 = scmp.lt.s32.totalorder %s5387_s17, %s4755_s22 }
  0xad   : > { %p4752_p8 = pnand %p4750_p2, %p4736_p5  ;;  %p4758_p4 = scmp.lt.s32.totalorder %s4756_s3, %s4749_s23 }
  0xaf   : > { %p4753_p3 = pneg %p4752_p8  ;;  %p4759_p9 = por %p4758_p4, %p4757_p10 }
  0xb1   : > { %p4760_p12 = pnand %p4759_p9, %p4753_p3 }
  0xb3   : > { %4763 = shalt.err (!%p4760_p12)
}
  0xb4   : > { %s5030_s30 = smov 128   ;;  %s5031_s15 = smov 8  }
  0xb5   : > { %4317 = dma.hbm_to_vmem [thread:$0]  (!%p5383_p6), %s5377_s25, 256, %s5387_s17, %s5390_s26, %s5030_s30, %s5030_s30, %s5031_s15  }
  0xb6   : > { %s4121_s14 = sshll.u32 %s5014_s16, 10  ;;  %s6380_s5 = sld [smem:[#allocation44_spill]] }
  0xb7   : > { %s500_s22 = scalar_lea.vmem [#allocation7], %s3967_s7  ;;  %s3971_s0 = sshll.u32 %s5187_s21, 8 }
  0xb8   : > { %s507_s3 = sshll.u32 %s500_s22, 4  ;;  %s5426_s3 = int_to_ptr.vmem [resolvable:$true] %s507_s3 }
  0xbc   : > { %s5422_s23 = scalar_lea.hbm %s6380_s5, %s4121_s14  ;;  %s4769_s19 = scalar_lea.hbm %s6380_s5, 2048 }
  0xbd   : > { %s4764_s27 = scalar_lea.hbm %s5422_s23, 1024  ;;  %p4770_p11 = scmp.lt.u32.totalorder %s5422_s23, %s6380_s5 }
  0xbe   : > { %p4765_p10 = scmp.ne.s32.totalorder %s5422_s23, %s4764_s27  ;;  %p4771_p6 = scmp.lt.u32.totalorder %s4769_s19, %s4764_s27 }
  0xbf   : > { %p4773_p0 = scmp.lt.u32.totalorder %s4764_s27, %s5422_s23 }
  0xc0   : > { %p4767_p3 = pnand %p4765_p10, %p5210_p7  ;;  %p4772_p5 = por %p4771_p6, %p4770_p11 }
  0xc2   : > { %p4768_p13 = pneg %p4767_p3  ;;  %p4774_p1 = por %p4773_p0, %p4772_p5 }
  0xc4   : > { %p4775_p2 = pnand %p4774_p1, %p4768_p13 }
  0xc6   : > { %4778 = shalt.err (!%p4775_p2)
}
  0xc7   : > { %s4779_s7 = scalar_lea.vmem %s5426_s3, 1024  ;;  %s5032_s15 = smov [#allocation7]  }
  0xc8   : > { %p4780_p8 = scmp.ne.s32.totalorder %s5426_s3, %s4779_s7  ;;  %s4784_s14 = sshll.u32 %s5032_s15, 4  ;;  %s4785_s14 = int_to_ptr.vmem [resolvable:$false] %s4784_s14 }
  0xc9   : > { %s4786_s8 = scalar_lea.vmem %s4785_s14, 2048  ;;  %p4787_p12 = scmp.lt.s32.totalorder %s5426_s3, %s4785_s14 }
  0xca   : > { %p4782_p4 = pnand %p4780_p8, %p5210_p7  ;;  %p4788_p10 = scmp.lt.s32.totalorder %s4786_s8, %s4779_s7 }
  0xcc   : > { %p4783_p9 = pneg %p4782_p4  ;;  %p4789_p3 = por %p4788_p10, %p4787_p12 }
  0xce   : > { %p4790_p11 = pnand %p4789_p3, %p4783_p9 }
  0xd0   : > { %4793 = shalt.err (!%p4790_p11)
}
  0xd1   : > { %s5033_s27 = smov 64   ;;  %s5034_s2 = smov 4  }
  0xd2   : > { %p6381_p13 = scmp.ne.s32.totalorder %s6355_s24, 0  ;;  %s6382_s22 = scalar_lea.sflag [#allocation6], %s5182_s20 }
  0xd3   : > { %s4122_s17 = sshll.u32 %s5014_s16, 12  ;;  %s6383_s9 = sld [smem:[#allocation48_spill]] }
  0xd4   : > { %4323 = dma.hbm_to_vmem [thread:$0]  (!%p6381_p13), %s5422_s23, 1024, %s5426_s3, %s6382_s22, %s5033_s27, %s5033_s27, %s5034_s2  }
  0xd5   : > { %s550_s30 = scalar_lea.vmem [#allocation10], %s3971_s0 }
  0xd6   : > { %s557_s7 = sshll.u32 %s550_s30, 4  ;;  %s5465_s7 = int_to_ptr.vmem [resolvable:$true] %s557_s7 }
  0xd9   : > { %s5461_s26 = scalar_lea.hbm %s6383_s9, %s4122_s17  ;;  %s4799_s14 = scalar_lea.hbm %s6383_s9, 8192 }
  0xda   : > { %s4794_s15 = scalar_lea.hbm %s5461_s26, 4096  ;;  %p4800_p1 = scmp.lt.u32.totalorder %s5461_s26, %s6383_s9 }
  0xdb   : > { %p4795_p6 = scmp.ne.s32.totalorder %s5461_s26, %s4794_s15  ;;  %p4801_p2 = scmp.lt.u32.totalorder %s4799_s14, %s4794_s15 }
  0xdc   : > { %p4803_p4 = scmp.lt.u32.totalorder %s4794_s15, %s5461_s26 }
  0xdd   : > { %p4797_p5 = pnand %p4795_p6, %p5210_p7  ;;  %p4802_p8 = por %p4801_p2, %p4800_p1 }
  0xdf   : > { %p4798_p0 = pneg %p4797_p5  ;;  %p4804_p9 = por %p4803_p4, %p4802_p8 }
  0xe1   : > { %p4805_p12 = pnand %p4804_p9, %p4798_p0 }
  0xe3   : > { %4808 = shalt.err (!%p4805_p12)
}
  0xe4   : > { %s4809_s25 = scalar_lea.vmem %s5465_s7, 4096  ;;  %s5035_s19 = smov [#allocation10]  }
  0xe5   : > { %p4810_p10 = scmp.ne.s32.totalorder %s5465_s7, %s4809_s25  ;;  %s4814_s30 = sshll.u32 %s5035_s19, 4  ;;  %s4815_s30 = int_to_ptr.vmem [resolvable:$false] %s4814_s30 }
  0xe6   : > { %s4816_s23 = scalar_lea.vmem %s4815_s30, 8192  ;;  %p4817_p6 = scmp.lt.s32.totalorder %s5465_s7, %s4815_s30 }
  0xe7   : > { %p4812_p3 = pnand %p4810_p10, %p5210_p7  ;;  %p4818_p5 = scmp.lt.s32.totalorder %s4816_s23, %s4809_s25 }
  0xe9   : > { %p4813_p11 = pneg %p4812_p3  ;;  %p4819_p1 = por %p4818_p5, %p4817_p6 }
  0xeb   : > { %p4820_p2 = pnand %p4819_p1, %p4813_p11 }
  0xed   : > { %4823 = shalt.err (!%p4820_p2)
}
  0xee   : > { %s5036_s15 = smov 256   ;;  %s5037_s3 = smov 16  }
  0xef   : > { %s6384_s14 = scalar_lea.sflag [#allocation9], %s5182_s20  ;;  %s6385_s11 = sld [smem:[#allocation50_spill]] }
  0xf0   : > { %4329 = dma.hbm_to_vmem [thread:$0]  (!%p6381_p13), %s5461_s26, 4096, %s5465_s7, %s6384_s14, %s5036_s15, %s5036_s15, %s5037_s3  }
  0xf1   : > { %s590_s19 = scalar_lea.vmem [#allocation13], %s3971_s0 }
  0xf2   : > { %s597_s30 = sshll.u32 %s590_s19, 4  ;;  %s5499_s30 = int_to_ptr.vmem [resolvable:$true] %s597_s30 }
  0xf5   : > { %s5495_s25 = scalar_lea.hbm %s6385_s11, %s4122_s17  ;;  %s4829_s15 = scalar_lea.hbm %s6385_s11, 8192 }
  0xf6   : > { %s4824_s23 = scalar_lea.hbm %s5495_s25, 4096  ;;  %p4830_p9 = scmp.lt.u32.totalorder %s5495_s25, %s6385_s11 }
  0xf7   : > { %p4825_p0 = scmp.ne.s32.totalorder %s5495_s25, %s4824_s23  ;;  %p4831_p12 = scmp.lt.u32.totalorder %s4829_s15, %s4824_s23 }
  0xf8   : > { %p4833_p3 = scmp.lt.u32.totalorder %s4824_s23, %s5495_s25 }
  0xf9   : > { %p4827_p8 = pnand %p4825_p0, %p5210_p7  ;;  %p4832_p10 = por %p4831_p12, %p4830_p9 }
  0xfb   : > { %p4828_p4 = pneg %p4827_p8  ;;  %p4834_p11 = por %p4833_p3, %p4832_p10 }
  0xfd   : > { %p4835_p6 = pnand %p4834_p11, %p4828_p4 }
  0xff   : > { %4838 = shalt.err (!%p4835_p6)
}
 0x100   : > { %s4839_s0 = scalar_lea.vmem %s5499_s30, 4096  ;;  %s5038_s14 = smov [#allocation13]  }
 0x101   : > { %p4840_p5 = scmp.ne.s32.totalorder %s5499_s30, %s4839_s0  ;;  %s4844_s8 = sshll.u32 %s5038_s14, 4  ;;  %s4845_s8 = int_to_ptr.vmem [resolvable:$false] %s4844_s8 }
 0x102   : > { %s4846_s22 = scalar_lea.vmem %s4845_s8, 8192  ;;  %p4847_p0 = scmp.lt.s32.totalorder %s5499_s30, %s4845_s8 }
 0x103   : > { %p4842_p1 = pnand %p4840_p5, %p5210_p7  ;;  %p4848_p8 = scmp.lt.s32.totalorder %s4846_s22, %s4839_s0 }
 0x105   : > { %p4843_p2 = pneg %p4842_p1  ;;  %p4849_p9 = por %p4848_p8, %p4847_p0 }
 0x107   : > { %p4850_p12 = pnand %p4849_p9, %p4843_p2 }
 0x109   : > { %4853 = shalt.err (!%p4850_p12)
}
 0x10a   : > { %s6386_s19 = scalar_lea.sflag [#allocation12], %s5182_s20  ;;  %s6387_s23 = sshll.u32 %s5014_s16, 4 }
 0x10b   : > { %4335 = dma.hbm_to_vmem [thread:$0]  (!%p6381_p13), %s5495_s25, 4096, %s5499_s30, %s6386_s19, %s5033_s27, %s5033_s27, %s5034_s2  }
 0x10c   : > { %s6388_s15 = sld [smem:[#allocation51_spill]]  ;;  %s610_s0 = scalar_lea.vmem [#allocation14], %s5187_s21 }
 0x10d   : > { %s617_s14 = sshll.u32 %s610_s0, 4  ;;  %s608_s20 = scalar_lea.sflag [#allocation15], %s5187_s21  ;;  %s618_s14 = int_to_ptr.vmem [resolvable:$true] %s617_s14 }
 0x112   : > { %s6389_s3 = smov %s6388_s15  ;;  %s5532_s17 = scalar_lea.hbm %s6388_s15, %s6387_s23 }
 0x113   : > { %s4854_s8 = scalar_lea.hbm %s5532_s17, 16  ;;  %s4859_s25 = scalar_lea.hbm %s6389_s3, 32 }
 0x114   : > { %p4855_p4 = scmp.ne.s32.totalorder %s5532_s17, %s4854_s8  ;;  %p4860_p11 = scmp.lt.u32.totalorder %s5532_s17, %s6389_s3 }
 0x115   : > { %p4861_p6 = scmp.lt.u32.totalorder %s4859_s25, %s4854_s8  ;;  %p4863_p1 = scmp.lt.u32.totalorder %s4854_s8, %s5532_s17 }
 0x116   : > { %p4857_p10 = pnand %p4855_p4, %p5210_p7 }
 0x117   : > { %p4862_p5 = por %p4861_p6, %p4860_p11 }
 0x118   : > { %p4858_p3 = pneg %p4857_p10 }
 0x119   : > { %p4864_p2 = por %p4863_p1, %p4862_p5 }
 0x11b   : > { %p4865_p0 = pnand %p4864_p2, %p4858_p3 }
 0x11d   : > { %4868 = shalt.err (!%p4865_p0)
}
 0x11e   : > { %s4869_s21 = scalar_lea.vmem %s618_s14, 16  ;;  %s5039_s19 = smov [#allocation14]  }
 0x11f   : > { %p4870_p8 = scmp.ne.s32.totalorder %s618_s14, %s4869_s21  ;;  %s4874_s23 = sshll.u32 %s5039_s19, 4  ;;  %s4875_s23 = int_to_ptr.vmem [resolvable:$false] %s4874_s23 }
 0x120   : > { %s4876_s26 = scalar_lea.vmem %s4875_s23, 32  ;;  %p4877_p4 = scmp.lt.s32.totalorder %s618_s14, %s4875_s23 }
 0x121   : > { %p4872_p9 = pnand %p4870_p8, %p5210_p7  ;;  %p4878_p10 = scmp.lt.s32.totalorder %s4876_s26, %s4869_s21 }
 0x123   : > { %p4873_p12 = pneg %p4872_p9  ;;  %p4879_p13 = por %p4878_p10, %p4877_p4 }
 0x125   : > { %p4880_p6 = pnand %p4879_p13, %p4873_p12 }
 0x127   : > { %4883 = shalt.err (!%p4880_p6)
}
 0x128   : > { %p6390_p11 = scmp.ne.s32.totalorder %s6355_s24, 0  ;;  %p6391_p3 = scmp.ne.s32.totalorder %s6360_s13, 0 }
 0x129   : > { %s5556_s1 = sand.u32 (!%p6391_p3), 1, %s4998_s29   ;;  %p6392_p7 = scmp.ne.s32.totalorder (!%p6391_p3), %s6368_s4, 0 }
 0x12a   : > { %4338 = dma.hbm_to_vmem [thread:$0]  (!%p6390_p11), %s5532_s17, 16, %s618_s14, %s608_s20  }
 0x12b   : > { %626 = sbr.rel (%p6391_p3) target bundleno = 3021 (0xbcd), region = 72  ;;  %s6323_s7 = sshll.u32 (!%p6391_p3), %s5556_s1, 4 }
 0x12c   : > { %s629_s15 = scalar_lea.sflag (!%p6391_p3), [#allocation3], %s5556_s1  ;;  %s5562_s0 = scalar_lea.vmem (!%p6391_p3), [#allocation2], %s6323_s7 }
 0x132   : > { %4957 = dma.done.wait (%p6392_p7), %s629_s15, 256  }
 0x133   : > { %4959 = vsyncadd (%p6392_p7), %s629_s15, 4294967040  ;;  %s6393_s24 = sld [smem:[#allocation23_spill]]  ;;  %s6394_s13 = sld [smem:[#allocation35_spill]] }
 0x134   : > { %s637_s17 = sand.u32 1, %s5307_s6  }
 0x135   : > { %s638_s8 = scalar_lea.sflag [#allocation6], %s637_s17 }
 0x139   : > { %s5570_s14 = sand.u32 1, %s6393_s24   ;;  %p6395_p13 = scmp.ne.s32.totalorder %s6394_s13, 0 }
 0x13a   : > { %s4294_s20 = smul.u32 192, %s5570_s14 }
 0x13c   : > { %s5573_s27 = scalar_lea.vmem [#allocation5], %s4294_s20 }
 0x13d   : > { %4961 = dma.done.wait (%p6395_p13), %s638_s8, 4096  }
 0x13e   : > { %4963 = vsyncadd (%p6395_p13), %s638_s8, 4294963200  ;;  %s3983_s4 = sshll.u32 %s5570_s14, 6  ;;  %s656_s25 = scalar_lea.sflag [#allocation9], %s637_s17 }
 0x13f   : > { %s5580_s2 = scalar_lea.vmem [#allocation7], %s3983_s4 }
 0x140   : > { %4965 = dma.done.wait (%p6395_p13), %s656_s25, 4112  }
 0x141   : > { %4967 = vsyncadd (%p6395_p13), %s656_s25, 4294963184  ;;  %s3984_s30 = sshll.u32 %s5570_s14, 8  ;;  %s3985_s22 = sshll.u32 %s5570_s14, 2 }
 0x142   : > { %s5589_s21 = scalar_lea.vmem [#allocation10], %s3984_s30  ;;  %s673_s19 = scalar_lea.sflag [#allocation12], %s637_s17 }
 0x143   : > { %s5591_s23 = scalar_lea.vmem [#allocation11], %s3985_s22 }
 0x144   : > { %4969 = dma.done.wait (%p6395_p13), %s673_s19, 4160  }
 0x145   : > { %4971 = vsyncadd (%p6395_p13), %s673_s19, 4294963136  ;;  %s5597_s26 = scalar_lea.vmem [#allocation13], %s3984_s30  ;;  %s691_s15 = scalar_lea.sflag [#allocation15], %s5570_s14 }
 0x146   : > { %4973 = dma.done.wait (%p6395_p13), %s691_s15, 16  }
 0x147   : > { %4975 = vsyncadd (%p6395_p13), %s691_s15, 4294967280  ;;  %s6396_s17 = sld [smem:[#allocation28_spill]]  ;;  %s6398_s24 = sld [smem:[#allocation41_spill]] }
 0x148   : > { %s6397_s25 = sld [smem:[#allocation40_spill]]  ;;  %s6399_s3 = sld [smem:[#allocation46_spill]] }
 0x149   : > { %s6400_s16 = sld [smem:[#allocation47_spill]]  ;;  %s6401_s4 = sld [smem:[#allocation43_spill]] }
 0x14a   : > { %s6402_s18 = sshll.u32 %s5556_s1, 4 }
 0x14d   : > { %p785_p5 = scmp.lt.s32.totalorder %s6396_s17, 1  ;;  %p3988_p1 = scmp.ne.s32.totalorder %s6396_s17, 0 }
 0x14e   : > { %v806_v0 = vld [vmem:[%s5562_s0] sm:$0xff] (!%p3988_p1)  ;;  %v807_v1 = vld [vmem:[%s5562_s0 + $0x8] sm:$0xff] (!%p3988_p1) }
 0x14f   : > { %s5607_s20 = scalar_select %p785_p5, %s6396_s17, 1 }
 0x150   : > { %805 = sbr.rel (%p3988_p1) target bundleno = 343 (0x157), region = 108 }
 0x151   : > { %s787_s30 = scalar_lea.vmem %s6397_s25, %s5607_s20  ;;  %s790_s13 = scalar_lea.vmem %s6398_s24, %s5607_s20 }
 0x152   : > { %s4295_s15 = smul.u32 3, %s5607_s20  ;;  %s797_s5 = scalar_lea.vmem %s6399_s3, %s5607_s20 }
 0x153   : > { %s800_s29 = scalar_lea.vmem %s6400_s16, %s5607_s20  ;;  %s5633_s25 = scalar_lea.vmem [#allocation16], %s6402_s18 }
 0x154   : > { %s5629_s28 = scalar_lea.vmem %s6401_s4, %s4295_s15  ;;  %808 = vst [vmem:[%s5633_s25] sm:$0xff] (!%p3988_p1), %v806_v0  ;;  %809 = vst [vmem:[%s5633_s25 + $0x8] sm:$0xff] (!%p3988_p1), %v807_v1 }
 0x157 PF: > { %v4466_v4 = vld [vmem:[%s5573_s27 + $0x4] ss:$12 sps:$4 sm:$0xff]   ;;  %v4468_v5 = vld [vmem:[%s5573_s27] ss:$12 sps:$4 sm:$0xff]   ;;  %v5040_v6 = vmov 0.0   ;;  %v5041_v32 = vmov 0   ;;  %v888_v55 = vlaneseq }
 0x158   : > { %4204 = vmatprep.subr.bf16.mxu1 %v5040_v6  ;;  %v4469_v7 = vld [vmem:[%s5573_s27 + $0x8] ss:$12 sps:$4 sm:$0xff]   ;;  %1031 = vmatprep.subr.bf16.mxu0 %v4466_v4  ;;  %v4472_v17 = vld [vmem:[%s5573_s27 + $0x18] ss:$12 sps:$4 sm:$0xff]   ;;  %v4473_v18 = vld [vmem:[%s5573_s27 + $0x20] ss:$12 sps:$4 sm:$0xff]  }
 0x159   : > { %v4470_v8 = vld [vmem:[%s5573_s27 + $0x1c] ss:$12 sps:$4 sm:$0xff]   ;;  %1032 = vmatpush1.bf16.msra.mxu0 %v4468_v5  ;;  %4205 = vmatpush3.bf16.msra.mxu1 %v4469_v7  ;;  %v4474_v19 = vld [vmem:[%s5573_s27 + $0x34] ss:$12 sps:$4 sm:$0xff]   ;;  %v4477_v21 = vld [vmem:[%s5573_s27 + $0x38] ss:$12 sps:$4 sm:$0xff]  }
 0x15a   : > { %1033 = vmatprep.subr.bf16.mxu0 %v4470_v8  ;;  %4206 = vmatprep.subr.bf16.mxu1 %v5040_v6  ;;  %v4476_v20 = vld [vmem:[%s5573_s27 + $0x30] ss:$12 sps:$4 sm:$0xff]   ;;  %v4478_v22 = vld [vmem:[%s5573_s27 + $0x4c] ss:$12 sps:$4 sm:$0xff]   ;;  %v4480_v23 = vld [vmem:[%s5573_s27 + $0x48] ss:$12 sps:$4 sm:$0xff]  }
 0x15b   : > { %v810_v2 = vld [vmem:[%s5633_s25] sm:$0xff]  ;;  %v811_v3 = vld [vmem:[%s5633_s25 + $0x8] sm:$0xff]  ;;  %1063 = vmatprep.mubr.bf16.mxu0 %v5041_v32  ;;  %vm5042_vm0 = vmmov 0   ;;  %v5704_v56 = vshrl.u32 %v888_v55, 7  ;;  %s5044_s7 = smov 96   ;;  %s5045_s0 = smov 32  }
 0x15c   : > { %814 = vadd.xlane.f32.xlu0 %v810_v2  ;;  %v4481_v24 = vld [vmem:[%s5573_s27 + $0x50] ss:$12 sps:$4 sm:$0xff]   ;;  %v4484_v26 = vld [vmem:[%s5573_s27 + $0x60] ss:$12 sps:$4 sm:$0xff]   ;;  %v4485_v27 = vld [vmem:[%s5573_s27 + $0x68] ss:$12 sps:$4 sm:$0xff]   ;;  %4220 = vmatprep.mubr.msk.bf16.mxu1 %vm5042_vm0, %v5040_v6 }
 0x15d   : > { %1034 = vmatpush1.bf16.msra.mxu0 %v4472_v17  ;;  %4207 = vmatpush3.bf16.msra.mxu1 %v4473_v18  ;;  %v4482_v25 = vld [vmem:[%s5573_s27 + $0x64] ss:$12 sps:$4 sm:$0xff]   ;;  %v4486_v28 = vld [vmem:[%s5573_s27 + $0x7c] ss:$12 sps:$4 sm:$0xff]   ;;  %v4489_v30 = vld [vmem:[%s5573_s27 + $0x80] ss:$12 sps:$4 sm:$0xff]  }
 0x15e   : > { %4208 = vmatprep.subr.bf16.mxu1 %v5040_v6  ;;  %1035 = vmatprep.subr.bf16.mxu0 %v4474_v19  ;;  %v4488_v29 = vld [vmem:[%s5573_s27 + $0x78] ss:$12 sps:$4 sm:$0xff]   ;;  %v4490_v31 = vld [vmem:[%s5573_s27 + $0x94] ss:$12 sps:$4 sm:$0xff]   ;;  %v4492_v33 = vld [vmem:[%s5573_s27 + $0x90] ss:$12 sps:$4 sm:$0xff]  }
 0x15f   : > { %v4493_v34 = vld [vmem:[%s5573_s27 + $0x98] ss:$12 sps:$4 sm:$0xff]   ;;  %v4496_v36 = vld [vmem:[%s5573_s27 + $0xa8] ss:$12 sps:$4 sm:$0xff]   ;;  %v4497_v37 = vld [vmem:[%s5573_s27 + $0xb0] ss:$12 sps:$4 sm:$0xff]  }
 0x160   : > { %816 = vadd.xlane.f32.xlu0 %v811_v3  ;;  %v4494_v35 = vld [vmem:[%s5573_s27 + $0xac] ss:$12 sps:$4 sm:$0xff]   ;;  %v3989_v46 = vld [vmem:[%s787_s30] ss:$0 sm:$0xff]  ;;  %v894_v57 = vsub.s32 1, %v5704_v56  ;;  %v890_v59 = vsub.s32 0, %v5704_v56 }
 0x161   : > { %1036 = vmatpush1.bf16.msra.mxu0 %v4476_v20  ;;  %4209 = vmatpush3.bf16.msra.mxu1 %v4477_v21  ;;  %v3990_v50 = vld [vmem:[%s790_s13] ss:$0 sm:$0xff]  ;;  %vm2005_vm1 = vcmask 261120   ;;  %vm2213_vm3 = vcmask 130048   ;;  %vm2780_vm5 = vcmask 523264   ;;  %vm2783_vm6 = vcmask 785408  }
 0x162   : > { %4210 = vmatprep.subr.bf16.mxu1 %v5040_v6  ;;  %1037 = vmatprep.subr.bf16.mxu0 %v4478_v22  ;;  %v5708_v58 = vld [vmem:[%s5629_s28] sm:$0x7]  ;;  %s5043_s28 = smov 64   ;;  %s6405_s27 = scalar_lea.vmem [#allocation8], %s5570_s14 }
 0x163   : > { %v895_v60 = vrot.slane %v5708_v58, %v894_v57  ;;  %v891_v1 = vrot.slane %v5708_v58, %v890_v59  ;;  %s6410_s22 = sld [smem:[#allocation52_spill]]  ;;  %s3668_s13 = scalar_lea.sflag [#allocation4], %s5556_s1 }
 0x164   : > { %p6411_p0 = scmp.ne.s32.totalorder %s6374_s10, 0  ;;  %s5048_s8 = smov [#allocation16]  }
 0x165   : > { %1038 = vmatpush1.bf16.msra.mxu0 %v4480_v23  ;;  %4211 = vmatpush3.bf16.msra.mxu1 %v4481_v24  ;;  %s4888_s4 = sshll.u32 %s5048_s8, 4  ;;  %s4889_s4 = int_to_ptr.vmem [resolvable:$false] %s4888_s4 }
 0x166   : > { %4212 = vmatprep.subr.bf16.mxu1 %v5040_v6  ;;  %1039 = vmatprep.subr.bf16.mxu0 %v4482_v25  ;;  %s4890_s9 = scalar_lea.vmem %s4889_s4, 512 }
 0x169   : > { %1040 = vmatpush1.bf16.msra.mxu0 %v4484_v26  ;;  %4213 = vmatpush3.bf16.msra.mxu1 %v4485_v27 }
 0x16a   : > { %1041 = vmatprep.subr.bf16.mxu0 %v4486_v28  ;;  %4214 = vmatprep.subr.bf16.mxu1 %v5040_v6 }
 0x16d   : > { %1042 = vmatpush1.bf16.msra.mxu0 %v4488_v29  ;;  %4215 = vmatpush3.bf16.msra.mxu1 %v4489_v30 }
 0x16e   : > { %1043 = vmatprep.subr.bf16.mxu0 %v4490_v31  ;;  %4216 = vmatprep.subr.bf16.mxu1 %v5040_v6 }
 0x171   : > { %1044 = vmatpush1.bf16.msra.mxu0 %v4492_v33  ;;  %4217 = vmatpush3.bf16.msra.mxu1 %v4493_v34 }
 0x172   : > { %1045 = vmatprep.subr.bf16.mxu0 %v4494_v35  ;;  %4218 = vmatprep.subr.bf16.mxu1 %v5040_v6 }
 0x175   : > { %1046 = vmatpush1.bf16.msra.mxu0 %v4496_v36  ;;  %4219 = vmatpush3.bf16.msra.mxu1 %v4497_v37 }
 0x176   : > { %4224 = vmatprep.subr.bf16.mxu1 %v5040_v6  ;;  %4248 = vmatprep.subr.bf16.mxu0 %v5040_v6 }
 0x1e9   : > { %v815_v9 = vpop.xlane.xlu0 %814 }
 0x1ea   : > { %v819_v10 = vmul.f32 0.0078125, %v815_v9 }
 0x1ec   : > { %v5648_v11 = vsub.f32 %v810_v2, %v819_v10 }
 0x1ed   : > { %v817_v12 = vpop.xlane.xlu0 %816 }
 0x1ee   : > { %v820_v13 = vmul.f32 0.0078125, %v817_v12  ;;  %v823_v14 = vmul.f32 %v5648_v11, %v5648_v11 }
 0x1f0   : > { %v5652_v15 = vsub.f32 %v811_v3, %v820_v13  ;;  %825 = vadd.xlane.f32.xlu1 %v823_v14  ;;  %v5046_v13 = vmov 1983009808  }
 0x1f1   : > { %v1140_v14 = vunpack.c.l.s4 %v5046_v13 }
 0x1f2   : > { %v824_v16 = vmul.f32 %v5652_v15, %v5652_v15 }
 0x1f3   : > { %v1141_v17 = vunpack.c.0.s8 %v1140_v14 }
 0x1f4   : > { %827 = vadd.xlane.f32.xlu1 %v824_v16 }
 0x1f5   : > { %v5744_v21 = vsub.s32 %v1141_v17, %v5704_v56 }
 0x27d   : > { %v826_v38 = vpop.xlane.xlu1 %825 }
 0x27e   : > { %v829_v39 = vmul.f32 0.0078125, %v826_v38 }
 0x280   : > { %v831_v40 = vadd.f32 1e-05, %v829_v39 }
 0x281   : > { %v828_v41 = vpop.xlane.xlu1 %827 }
 0x282   : > { %4586 = vrsqrt.f32 %v831_v40  ;;  %v830_v42 = vmul.f32 0.0078125, %v828_v41 }
 0x284   : > { %v832_v43 = vadd.f32 1e-05, %v830_v42 }
 0x286   : > { %4588 = vrsqrt.f32 %v832_v43 }
 0x28c   : > { %v4587_v44 = vpop.eup %4586 }
 0x28d   : > { %v835_v45 = vmul.f32 %v4587_v44, %v5648_v11 }
 0x28f   : > { %v843_v49 = vmul.f32 %v3989_v46, %v835_v45 }
 0x290   : > { %v4589_v47 = vpop.eup %4588 }
 0x291   : > { %v836_v48 = vmul.f32 %v4589_v47, %v5652_v15  ;;  %v851_v52 = vadd.f32 %v3990_v50, %v843_v49  ;;  %v5047_v15 = vmov 1934713408  }
 0x292   : > { %v1172_v16 = vunpack.c.l.s4 %v5047_v15 }
 0x293   : > { %v844_v51 = vmul.f32 %v3989_v46, %v836_v48 }
 0x294   : > { %v1173_v20 = vunpack.c.0.s8 %v1172_v16 }
 0x295   : > { %v852_v53 = vadd.f32 %v3990_v50, %v844_v51 }
 0x296   : > { %v5747_v28 = vsub.s32 %v1173_v20, %v5704_v56 }
 0x297   : > { %v853_v54 = vpack.c.bf16 %v852_v53, %v851_v52 }
 0x299   : > { %1064 = vmatmul.mubr.bf16.vlgmr.msra.gmra.mrb[0].mxu0 %v853_v54  ;;  %4221 = vmatmul.mubr.bf16.vlgmr.msra.gmra.mrb[0].mxu1 %v853_v54 }
 0x29a   : > { %4226 = vmatprep.mubr.msk.bf16.mxu1 %vm5042_vm0, %v5040_v6  ;;  %4250 = vmatprep.mubr.msk.bf16.mxu0 %vm5042_vm0, %v5040_v6 }
 0x36c   : > { %v1065_v61 = vpop.f32.mrb[0].mxu0  ;;  %v5714_v62 = vpop.f32.mrb[0].mxu1 }
 0x36d   : > { %v1067_v63 = vpop.f32.mrb[1].mxu0  ;;  %v4222_v0 = vpop.f32.mrb[1].mxu1  ;;  %v1066_v8 = vadd.f32 %v1065_v61, %v891_v1 }
 0x36e   : > { %v1068_v2 = vadd.f32 %v1067_v63, %v895_v60  ;;  %v1069_v3 = vpop.f32.mrb[2].mxu0  ;;  %v5719_v4 = vpop.f32.mrb[2].mxu1 }
 0x36f   : > { %v1071_v5 = vpop.f32.mrb[3].mxu0  ;;  %v4223_v7 = vpop.f32.mrb[3].mxu1  ;;  %v5725_v10 = vmul.f32 0.17677669, %v1066_v8  ;;  %v1070_v11 = vadd.f32 %v1069_v3, %v891_v1 }
 0x370   : > { %1421 = vrot.lane.b32.xlu1 %v1068_v2, %s5043_s28  ;;  %1415 = vrot.lane.b32.xlu0 %v1068_v2, %s5044_s7  ;;  %v1072_v9 = vadd.f32 %v1071_v5, %v895_v60 }
 0x371   : > { %v5733_v12 = vmul.f32 0.17677669, %v1070_v11 }
 0x374   : > { %1417 = vrot.lane.b32.xlu1 %v1072_v9, %s5044_s7  ;;  %1427 = vrot.lane.b32.xlu0 %v1068_v2, %s5045_s0 }
 0x378   : > { %1423 = vrot.lane.b32.xlu1 %v1072_v9, %s5043_s28  ;;  %1119 = vrot.lane.b32.xlu0 %v5725_v10, %s5044_s7 }
 0x37c   : > { %1429 = vrot.lane.b32.xlu1 %v1072_v9, %s5045_s0  ;;  %1125 = vrot.lane.b32.xlu0 %v5725_v10, %s5043_s28 }
 0x380   : > { %1121 = vrot.lane.b32.xlu1 %v5733_v12, %s5044_s7  ;;  %1131 = vrot.lane.b32.xlu0 %v5725_v10, %s5045_s0 }
 0x384   : > { %1127 = vrot.lane.b32.xlu1 %v5733_v12, %s5043_s28 }
 0x388   : > { %1133 = vrot.lane.b32.xlu1 %v5733_v12, %s5045_s0 }
 0x3e2   : > { %v1422_v18 = vpop.permute.xlu1 %1421  ;;  %v1416_v19 = vpop.permute.xlu0 %1415 }
 0x3e3   : > { %v1433_v22 = vcombine.low %v1068_v2, %v1422_v18  ;;  %v1434_v23 = vcombine.high %v1068_v2, %v1422_v18 }
 0x3e5   : > { %v1441_v29 = vrot.slane %v1433_v22, %v5744_v21  ;;  %v1448_v30 = vrot.slane %v1434_v23, %v5744_v21 }
 0x3e6   : > { %v1418_v24 = vpop.permute.xlu1 %1417  ;;  %v1428_v25 = vpop.permute.xlu0 %1427 }
 0x3e7   : > { %v1449_v26 = vcombine.low %v1416_v19, %v1428_v25  ;;  %v1450_v27 = vcombine.high %v1416_v19, %v1428_v25 }
 0x3e9   : > { %v1457_v31 = vrot.slane %v1449_v26, %v5744_v21  ;;  %v1464_v33 = vrot.slane %v1450_v27, %v5744_v21 }
 0x3ea   : > { %v1424_v34 = vpop.permute.xlu1 %1423  ;;  %v1120_v35 = vpop.permute.xlu0 %1119 }
 0x3eb   : > { %v1465_v36 = vcombine.low %v1441_v29, %v1457_v31  ;;  %v1466_v37 = vcombine.high %v1441_v29, %v1457_v31  ;;  %v1481_v38 = vcombine.low %v1448_v30, %v1464_v33  ;;  %v1482_v39 = vcombine.high %v1448_v30, %v1464_v33 }
 0x3ec   : > { %v1501_v40 = vcombine.low %v1072_v9, %v1424_v34  ;;  %v1502_v41 = vcombine.high %v1072_v9, %v1424_v34 }
 0x3ed   : > { %v1473_v42 = vrot.slane %v1465_v36, %v5747_v28  ;;  %v1480_v43 = vrot.slane %v1466_v37, %v5747_v28  ;;  %v1489_v44 = vrot.slane %v1481_v38, %v5747_v28  ;;  %v1496_v45 = vrot.slane %v1482_v39, %v5747_v28 }
 0x3ee   : > { %v1430_v46 = vpop.permute.xlu1 %1429  ;;  %v1126_v47 = vpop.permute.xlu0 %1125  ;;  %v1509_v54 = vrot.slane %v1501_v40, %v5744_v21  ;;  %v1516_v60 = vrot.slane %v1502_v41, %v5744_v21 }
 0x3ef   : > { %v1569_v48 = vcombine.low %v1473_v42, %v1480_v43  ;;  %v4019_v49 = vcombine.high %v1473_v42, %v1480_v43  ;;  %v1585_v50 = vcombine.low %v1489_v44, %v1496_v45  ;;  %v4020_v51 = vcombine.high %v1489_v44, %v1496_v45 }
 0x3f0   : > { %v1517_v52 = vcombine.low %v1418_v24, %v1430_v46  ;;  %v1518_v53 = vcombine.high %v1418_v24, %v1430_v46  ;;  %v1137_v61 = vcombine.low %v5725_v10, %v1126_v47  ;;  %v1138_v63 = vcombine.high %v5725_v10, %v1126_v47 }
 0x3f1   : > { %v5762_v0 = vrot.slane %v1569_v48, %v5744_v21  ;;  %v5765_v1 = vrot.slane %v4019_v49, %v5744_v21  ;;  %v5770_v8 = vrot.slane %v1585_v50, %v5744_v21  ;;  %v5773_v9 = vrot.slane %v4020_v51, %v5744_v21 }
 0x3f2   : > { %v1525_v2 = vrot.slane %v1517_v52, %v5744_v21  ;;  %v1532_v3 = vrot.slane %v1518_v53, %v5744_v21  ;;  %v1122_v5 = vpop.permute.xlu1 %1121  ;;  %v1132_v7 = vpop.permute.xlu0 %1131  ;;  %v1145_v17 = vrot.slane %v1137_v61, %v5744_v21  ;;  %v1152_v18 = vrot.slane %v1138_v63, %v5744_v21 }
 0x3f3   : > { %v1153_v11 = vcombine.low %v1120_v35, %v1132_v7  ;;  %v1154_v10 = vcombine.high %v1120_v35, %v1132_v7  ;;  %v1601_v38 = vcombine.low %v5762_v0, %v5765_v1  ;;  %v1617_v39 = vcombine.low %v5770_v8, %v5773_v9 }
 0x3f4   : > { %v1533_v13 = vcombine.low %v1509_v54, %v1525_v2  ;;  %v1534_v14 = vcombine.high %v1509_v54, %v1525_v2  ;;  %v1549_v15 = vcombine.low %v1516_v60, %v1532_v3  ;;  %v1550_v16 = vcombine.high %v1516_v60, %v1532_v3 }
 0x3f5   : > { %v1161_v19 = vrot.slane %v1153_v11, %v5744_v21  ;;  %v1168_v20 = vrot.slane %v1154_v10, %v5744_v21 }
 0x3f6   : > { %v1541_v22 = vrot.slane %v1533_v13, %v5747_v28  ;;  %v1548_v23 = vrot.slane %v1534_v14, %v5747_v28  ;;  %v1557_v24 = vrot.slane %v1549_v15, %v5747_v28  ;;  %v1564_v25 = vrot.slane %v1550_v16, %v5747_v28  ;;  %v1128_v26 = vpop.permute.xlu1 %1127 }
 0x3f7   : > { %v1169_v27 = vcombine.low %v1145_v17, %v1161_v19  ;;  %v1170_v29 = vcombine.high %v1145_v17, %v1161_v19  ;;  %v1185_v30 = vcombine.low %v1152_v18, %v1168_v20  ;;  %v1186_v31 = vcombine.high %v1152_v18, %v1168_v20 }
 0x3f8   : > { %v1637_v40 = vcombine.low %v1541_v22, %v1548_v23  ;;  %v4021_v41 = vcombine.high %v1541_v22, %v1548_v23  ;;  %v1653_v42 = vcombine.low %v1557_v24, %v1564_v25  ;;  %v4022_v43 = vcombine.high %v1557_v24, %v1564_v25 }
 0x3f9   : > { %v1177_v33 = vrot.slane %v1169_v27, %v5747_v28  ;;  %v1184_v34 = vrot.slane %v1170_v29, %v5747_v28  ;;  %v1193_v35 = vrot.slane %v1185_v30, %v5747_v28  ;;  %v1200_v36 = vrot.slane %v1186_v31, %v5747_v28 }
 0x3fa   : > { %v1134_v37 = vpop.permute.xlu1 %1133  ;;  %v1205_v44 = vcombine.low %v5733_v12, %v1128_v26  ;;  %v1206_v45 = vcombine.high %v5733_v12, %v1128_v26  ;;  %v1644_v61 = vrot.slane %v1637_v40, %v5744_v21  ;;  %v1652_v63 = vrot.slane %v4021_v41, %v5744_v21 }
 0x3fb   : > { %v1221_v46 = vcombine.low %v1122_v5, %v1134_v37  ;;  %v1222_v47 = vcombine.high %v1122_v5, %v1134_v37  ;;  %v1273_v48 = vcombine.low %v1177_v33, %v1184_v34  ;;  %v4015_v49 = vcombine.high %v1177_v33, %v1184_v34 }
 0x3fc   : > { %v1289_v50 = vcombine.low %v1193_v35, %v1200_v36  ;;  %v4016_v51 = vcombine.high %v1193_v35, %v1200_v36  ;;  %v1213_v52 = vrot.slane %v1205_v44, %v5744_v21  ;;  %v1220_v53 = vrot.slane %v1206_v45, %v5744_v21 }
 0x3fd   : > { %v1229_v54 = vrot.slane %v1221_v46, %v5744_v21  ;;  %v1236_v60 = vrot.slane %v1222_v47, %v5744_v21  ;;  %v1660_v12 = vrot.slane %v1653_v42, %v5744_v21  ;;  %v1668_v2 = vrot.slane %v4022_v43, %v5744_v21 }
 0x3fe   : > { %v5802_v10 = vrot.slane %v1273_v48, %v5744_v21  ;;  %v5805_v13 = vrot.slane %v4015_v49, %v5744_v21  ;;  %v5808_v14 = vrot.slane %v1289_v50, %v5744_v21  ;;  %v5811_v15 = vrot.slane %v4016_v51, %v5744_v21 }
 0x3ff   : > { %v1237_v3 = vcombine.low %v1213_v52, %v1229_v54  ;;  %v1238_v5 = vcombine.high %v1213_v52, %v1229_v54  ;;  %v1253_v7 = vcombine.low %v1220_v53, %v1236_v60  ;;  %v1254_v11 = vcombine.high %v1220_v53, %v1236_v60 }
 0x400   : > { %v1609_v20 = vrot.slane %v1601_v38, %v5747_v28  ;;  %v1625_v22 = vrot.slane %v1617_v39, %v5747_v28  ;;  %v1669_v23 = vcombine.low %v1644_v61, %v1652_v63  ;;  %v1685_v24 = vcombine.low %v1660_v12, %v1668_v2 }
 0x401   : > { %v1245_v16 = vrot.slane %v1237_v3, %v5747_v28  ;;  %v1252_v17 = vrot.slane %v1238_v5, %v5747_v28  ;;  %v1261_v18 = vrot.slane %v1253_v7, %v5747_v28  ;;  %v1268_v19 = vrot.slane %v1254_v11, %v5747_v28 }
 0x402   : > { %v1305_v30 = vcombine.low %v5802_v10, %v5805_v13  ;;  %v1321_v31 = vcombine.low %v5808_v14, %v5811_v15  ;;  %v1677_v33 = vrot.slane %v1669_v23, %v5747_v28  ;;  %v1693_v34 = vrot.slane %v1685_v24, %v5747_v28 }
 0x403   : > { %v1341_v25 = vcombine.low %v1245_v16, %v1252_v17  ;;  %v4017_v26 = vcombine.high %v1245_v16, %v1252_v17  ;;  %v1357_v27 = vcombine.low %v1261_v18, %v1268_v19  ;;  %v4018_v29 = vcombine.high %v1261_v18, %v1268_v19 }
 0x404   : > { %v1633_v39 = vcombine.low %v1609_v20, %v1625_v22  ;;  %v1701_v40 = vcombine.low %v1677_v33, %v1693_v34  ;;  %v1313_v43 = vrot.slane %v1305_v30, %v5747_v28  ;;  %v1329_v44 = vrot.slane %v1321_v31, %v5747_v28 }
 0x405   : > { %v1348_v35 = vrot.slane %v1341_v25, %v5744_v21  ;;  %v1356_v36 = vrot.slane %v4017_v26, %v5744_v21  ;;  %v1364_v37 = vrot.slane %v1357_v27, %v5744_v21  ;;  %v1372_v38 = vrot.slane %v4018_v29, %v5744_v21 }
 0x406   : > { %v1705_v45 = vpack.c.bf16 %v1701_v40, %v1633_v39  ;;  %v1702_v49 = vcombine.high %v1677_v33, %v1693_v34  ;;  %v1670_v50 = vcombine.high %v1644_v61, %v1652_v63  ;;  %v1686_v52 = vcombine.high %v1660_v12, %v1668_v2 }
 0x407   : > { %v1373_v41 = vcombine.low %v1348_v35, %v1356_v36  ;;  %v1389_v42 = vcombine.low %v1364_v37, %v1372_v38  ;;  %v1337_v53 = vcombine.low %v1313_v43, %v1329_v44  ;;  %v1634_v54 = vcombine.high %v1609_v20, %v1625_v22 }
 0x408   : > { %v2010_v48 = vsel %vm2005_vm1, %v1705_v45, 0  ;;  %v1602_v60 = vcombine.high %v5762_v0, %v5765_v1  ;;  %v1618_v3 = vcombine.high %v5770_v8, %v5773_v9  ;;  %v1684_v11 = vrot.slane %v1670_v50, %v5747_v28 }
 0x409   : > { %v1381_v46 = vrot.slane %v1373_v41, %v5747_v28  ;;  %v1397_v47 = vrot.slane %v1389_v42, %v5747_v28  ;;  %4225 = vmatpush3.bf16.xpose.msra.mxu1 %v2010_v48  ;;  %v1706_v7 = vpack.c.bf16 %v1702_v49, %v1634_v54  ;;  %v1700_v16 = vrot.slane %v1686_v52, %v5747_v28 }
 0x40a   : > { %4230 = vmatprep.subr.bf16.mxu1 %v5040_v6  ;;  %v1616_v61 = vrot.slane %v1602_v60, %v5747_v28  ;;  %v1632_v63 = vrot.slane %v1618_v3, %v5747_v28  ;;  %v1374_v0 = vcombine.high %v1348_v35, %v1356_v36  ;;  %v1390_v1 = vcombine.high %v1364_v37, %v1372_v38 }
 0x40b   : > { %v1405_v51 = vcombine.low %v1381_v46, %v1397_v47  ;;  %v2057_v12 = vsel %vm2005_vm1, %v1706_v7, 0  ;;  %v1703_v2 = vcombine.low %v1684_v11, %v1700_v16  ;;  %v1406_v8 = vcombine.high %v1381_v46, %v1397_v47 }
 0x40c   : > { %v1635_v9 = vcombine.low %v1616_v61, %v1632_v63  ;;  %v1306_v17 = vcombine.high %v5802_v10, %v5805_v13  ;;  %v1322_v18 = vcombine.high %v5808_v14, %v5811_v15  ;;  %v1338_v19 = vcombine.high %v1313_v43, %v1329_v44 }
 0x40d   : > { %v1409_v5 = vpack.c.bf16 %v1405_v51, %v1337_v53  ;;  %v1388_v22 = vrot.slane %v1374_v0, %v5747_v28  ;;  %v1404_v23 = vrot.slane %v1390_v1, %v5747_v28  ;;  %v1704_v29 = vcombine.high %v1684_v11, %v1700_v16 }
 0x40e   : > { %v1707_v20 = vpack.c.bf16 %v1703_v2, %v1635_v9  ;;  %v1410_v24 = vpack.c.bf16 %v1406_v8, %v1338_v19  ;;  %v1320_v25 = vrot.slane %v1306_v17, %v5747_v28  ;;  %v1336_v26 = vrot.slane %v1322_v18, %v5747_v28 }
 0x40f   : > { %v1407_v10 = vcombine.low %v1388_v22, %v1404_v23  ;;  %v1636_v13 = vcombine.high %v1616_v61, %v1632_v63  ;;  %v1408_v33 = vcombine.high %v1388_v22, %v1404_v23  ;;  %v2198_v36 = vand.u32 127, %v888_v55 }
 0x410   : > { %4227 = vmatmul.mubr.msk.bf16.vlgmr.msra.gmra.mrb[4].mxu1 %vm2005_vm1, %v1409_v5  ;;  %v2104_v27 = vsel %vm2005_vm1, %v1707_v20, 0  ;;  %v1339_v14 = vcombine.low %v1320_v25, %v1336_v26  ;;  %v1340_v34 = vcombine.high %v1320_v25, %v1336_v26  ;;  %v2196_v37 = vadd.s32 8, %v5704_v56 }
 0x411   : > { %4231 = vmatpush3.bf16.xpose.msra.mxu1 %v2057_v12  ;;  %4232 = vmatprep.mubr.msk.bf16.mxu1 %vm5042_vm0, %v5040_v6  ;;  %v1708_v15 = vpack.c.bf16 %v1704_v29, %v1636_v13  ;;  %vm2199_vm2 = vcmp.le.s32.totalorder %v2198_v36, %v5704_v56  ;;  %v898_v9 = vsub.s32 2, %v5704_v56 }
 0x412   : > { %4236 = vmatprep.subr.bf16.mxu1 %v5040_v6  ;;  %v1411_v30 = vpack.c.bf16 %v1407_v10, %v1339_v14  ;;  %v1412_v35 = vpack.c.bf16 %v1408_v33, %v1340_v34  ;;  %vm2200_vm4 = vcmp.le.s32.totalorder %v2198_v36, %v2196_v37 }
 0x413   : > { %v2151_v31 = vsel %vm2005_vm1, %v1708_v15, 0  ;;  %v899_v17 = vrot.slane %v5708_v58, %v898_v9 }
 0x415   : > { %v5901_v18 = vadd.f32 %v5719_v4, %v899_v17  ;;  %v5906_v19 = vadd.f32 %v5714_v62, %v899_v17 }
 0x418   : > { %4233 = vmatmul.mubr.msk.bf16.vlgmr.msra.gmra.mrb[8].mxu1 %vm2005_vm1, %v1410_v24 }
 0x419   : > { %4237 = vmatpush3.bf16.xpose.msra.mxu1 %v2104_v27  ;;  %4238 = vmatprep.mubr.msk.bf16.mxu1 %vm5042_vm0, %v5040_v6 }
 0x41a   : > { %4242 = vmatprep.subr.bf16.mxu1 %v5040_v6 }
 0x420   : > { %4239 = vmatmul.mubr.msk.bf16.vlgmr.msra.gmra.mrb[12].mxu1 %vm2005_vm1, %v1411_v30 }
 0x421   : > { %4243 = vmatpush3.bf16.xpose.msra.mxu1 %v2151_v31  ;;  %4244 = vmatprep.mubr.msk.bf16.mxu1 %vm5042_vm0, %v5040_v6 }
 0x422   : > { %4254 = vmatprep.subr.bf16.mxu1 %v5040_v6 }
 0x428   : > { %4245 = vmatmul.mubr.msk.bf16.vlgmr.msra.gmra.mrb[16].mxu1 %vm2005_vm1, %v1412_v35 }
 0x429   : > { %4256 = vmatprep.mubr.msk.bf16.mxu1 %vm5042_vm0, %v5040_v6 }
 0x4e3   : > { %v2046_v38 = vpop.f32.mrb[4].mxu1 }
 0x4e4   : > { %v2205_v39 = vsel %vm2199_vm2, %v2046_v38, -1e+30  ;;  %v4228_v40 = vpop.f32.mrb[5].mxu1 }
 0x4e5   : > { %v2049_v41 = vpop.f32.mrb[6].mxu1  ;;  %v2214_v42 = vsel %vm2213_vm3, %v2205_v39, -inf }
 0x4e6   : > { %v2206_v43 = vsel %vm2200_vm4, %v2049_v41, -1e+30  ;;  %2215 = vmax.xlane.f32.xlu0 %v2214_v42  ;;  %v4229_v44 = vpop.f32.mrb[7].mxu1 }
 0x4e7   : > { %v2217_v55 = vsel %vm2213_vm3, %v2206_v43, -inf }
 0x4e8   : > { %2218 = vmax.xlane.f32.xlu1 %v2217_v55 }
 0x4eb   : > { %v2093_v45 = vpop.f32.mrb[8].mxu1 }
 0x4ec   : > { %v2207_v46 = vsel %vm2199_vm2, %v2093_v45, -1e+30  ;;  %v4234_v47 = vpop.f32.mrb[9].mxu1 }
 0x4ed   : > { %v2096_v48 = vpop.f32.mrb[10].mxu1  ;;  %v2220_v49 = vsel %vm2213_vm3, %v2207_v46, -inf }
 0x4ee   : > { %v2208_v50 = vsel %vm2200_vm4, %v2096_v48, -1e+30  ;;  %2221 = vmax.xlane.f32.xlu0 %v2220_v49  ;;  %v4235_v51 = vpop.f32.mrb[11].mxu1 }
 0x4ef   : > { %v2223_v52 = vsel %vm2213_vm3, %v2208_v50, -inf }
 0x4f2   : > { %2224 = vmax.xlane.f32.xlu0 %v2223_v52 }
 0x4f3   : > { %v2140_v53 = vpop.f32.mrb[12].mxu1 }
 0x4f4   : > { %v2209_v54 = vsel %vm2199_vm2, %v2140_v53, -1e+30  ;;  %v4240_v60 = vpop.f32.mrb[13].mxu1 }
 0x4f5   : > { %v2143_v3 = vpop.f32.mrb[14].mxu1  ;;  %v2226_v5 = vsel %vm2213_vm3, %v2209_v54, -inf }
 0x4f6   : > { %v5886_v7 = vsel %vm2200_vm4, %v2143_v3, -1e+30  ;;  %2227 = vmax.xlane.f32.xlu0 %v2226_v5  ;;  %v4241_v11 = vpop.f32.mrb[15].mxu1 }
 0x4f7   : > { %v2229_v16 = vsel %vm2213_vm3, %v5886_v7, -inf }
 0x4f8   : > { %2230 = vmax.xlane.f32.xlu1 %v2229_v16 }
 0x4fb   : > { %v2187_v61 = vpop.f32.mrb[16].mxu1 }
 0x4fc   : > { %v2211_v63 = vsel %vm2199_vm2, %v2187_v61, -1e+30  ;;  %v4246_v12 = vpop.f32.mrb[17].mxu1 }
 0x4fd   : > { %v2190_v2 = vpop.f32.mrb[18].mxu1  ;;  %v2232_v0 = vsel %vm2213_vm3, %v2211_v63, -inf }
 0x4fe   : > { %v5894_v1 = vsel %vm2200_vm4, %v2190_v2, -1e+30  ;;  %2233 = vmax.xlane.f32.xlu0 %v2232_v0  ;;  %v4247_v8 = vpop.f32.mrb[19].mxu1 }
 0x4ff   : > { %v2235_v58 = vsel %vm2213_vm3, %v5894_v1, -inf }
 0x509   : > { %1713 = vrot.lane.b32.xlu1 %v5901_v18, %s5044_s7 }
 0x50d   : > { %1717 = vrot.lane.b32.xlu1 %v5906_v19, %s5043_s28 }
 0x514   : > { %1711 = vrot.lane.b32.xlu0 %v5906_v19, %s5044_s7 }
 0x518   : > { %1723 = vrot.lane.b32.xlu0 %v5906_v19, %s5045_s0 }
 0x531   : > { %2236 = vmax.xlane.f32.xlu1 %v2235_v58 }
 0x542   : > { %1719 = vrot.lane.b32.xlu1 %v5901_v18, %s5043_s28 }
 0x573   : > { %v2216_v4 = vpop.xlane.xlu0 %2215 }
 0x574   : > { %v2238_v20 = vsub.f32 %v2205_v39, %v2216_v4 }
 0x575   : > { %v2219_v62 = vpop.xlane.xlu1 %2218 }
 0x576   : > { %v2246_v22 = vmul.f32 1.442695, %v2238_v20  ;;  %v2239_v23 = vsub.f32 %v2206_v43, %v2219_v62 }
 0x578   : > { %4590 = vpow2.f32 %v2246_v22  ;;  %v2248_v24 = vmul.f32 1.442695, %v2239_v23 }
 0x57a   : > { %4592 = vpow2.f32 %v2248_v24 }
 0x57b   : > { %v2222_v25 = vpop.xlane.xlu0 %2221 }
 0x57c   : > { %v2240_v26 = vsub.f32 %v2207_v46, %v2222_v25 }
 0x57e   : > { %v2250_v27 = vmul.f32 1.442695, %v2240_v26 }
 0x57f   : > { %v2225_v29 = vpop.xlane.xlu0 %2224 }
 0x580   : > { %4594 = vpow2.f32 %v2250_v27  ;;  %v2241_v10 = vsub.f32 %v2208_v50, %v2225_v29 }
 0x582   : > { %v5918_v13 = vpop.eup %4590  ;;  %v2252_v14 = vmul.f32 1.442695, %v2241_v10 }
 0x583   : > { %v2228_v15 = vpop.xlane.xlu0 %2227  ;;  %v2262_v30 = vsel %vm2213_vm3, %v5918_v13, 0.0 }
 0x584   : > { %v5922_v31 = vpop.eup %4592  ;;  %4596 = vpow2.f32 %v2252_v14  ;;  %v2242_v33 = vsub.f32 %v2209_v54, %v2228_v15  ;;  %2263 = vadd.xlane.f32.xlu0 %v2262_v30 }
 0x585   : > { %v2265_v34 = vsel %vm2213_vm3, %v5922_v31, 0.0  ;;  %v2231_v46 = vpop.xlane.xlu1 %2230 }
 0x586   : > { %v2254_v35 = vmul.f32 1.442695, %v2242_v33  ;;  %2266 = vadd.xlane.f32.xlu1 %v2265_v34  ;;  %v2243_v47 = vsub.f32 %v5886_v7, %v2231_v46 }
 0x588   : > { %4598 = vpow2.f32 %v2254_v35  ;;  %v2256_v48 = vmul.f32 1.442695, %v2243_v47 }
 0x589   : > { %v1714_v49 = vpop.permute.xlu1 %1713 }
 0x58a   : > { %v5926_v36 = vpop.eup %4594 }
 0x58b   : > { %v2234_v37 = vpop.xlane.xlu0 %2233  ;;  %v2268_v38 = vsel %vm2213_vm3, %v5926_v36, 0.0 }
 0x58c   : > { %v2244_v39 = vsub.f32 %v2211_v63, %v2234_v37  ;;  %2269 = vadd.xlane.f32.xlu0 %v2268_v38 }
 0x58d   : > { %v1718_v50 = vpop.permute.xlu1 %1717 }
 0x58e   : > { %v5930_v40 = vpop.eup %4596  ;;  %v2258_v41 = vmul.f32 1.442695, %v2244_v39  ;;  %v1729_v61 = vcombine.low %v5906_v19, %v1718_v50  ;;  %v1730_v12 = vcombine.high %v5906_v19, %v1718_v50 }
 0x58f   : > { %v2271_v42 = vsel %vm2213_vm3, %v5930_v40, 0.0  ;;  %v1712_v7 = vpop.permute.xlu0 %1711 }
 0x590   : > { %4600 = vpow2.f32 %v2258_v41  ;;  %2272 = vadd.xlane.f32.xlu1 %v2271_v42  ;;  %v1737_v0 = vrot.slane %v1729_v61, %v5744_v21  ;;  %v1744_v17 = vrot.slane %v1730_v12, %v5744_v21 }
 0x591   : > { %4602 = vpow2.f32 %v2256_v48 }
 0x592   : > { %v5934_v43 = vpop.eup %4598 }
 0x593   : > { %v2274_v44 = vsel %vm2213_vm3, %v5934_v43, 0.0  ;;  %v1724_v11 = vpop.permute.xlu0 %1723 }
 0x594   : > { %2275 = vadd.xlane.f32.xlu0 %v2274_v44  ;;  %v1745_v16 = vcombine.low %v1712_v7, %v1724_v11  ;;  %v1746_v63 = vcombine.high %v1712_v7, %v1724_v11 }
 0x596   : > { %v1753_v2 = vrot.slane %v1745_v16, %v5744_v21 }
 0x598   : > { %v1761_v58 = vcombine.low %v1737_v0, %v1753_v2  ;;  %v1762_v4 = vcombine.high %v1737_v0, %v1753_v2 }
 0x59a   : > { %v5938_v55 = vpop.eup %4600  ;;  %v1769_v23 = vrot.slane %v1761_v58, %v5747_v28  ;;  %v1776_v24 = vrot.slane %v1762_v4, %v5747_v28 }
 0x59b   : > { %v2280_v45 = vsel %vm2213_vm3, %v5938_v55, 0.0  ;;  %v5946_v53 = vpop.eup %4602 }
 0x59c   : > { %2281 = vadd.xlane.f32.xlu0 %v2280_v45  ;;  %v2277_v60 = vsel %vm2213_vm3, %v5946_v53, 0.0  ;;  %v1865_v27 = vcombine.low %v1769_v23, %v1776_v24  ;;  %v4023_v15 = vcombine.high %v1769_v23, %v1776_v24 }
 0x59e   : > { %v1872_v38 = vrot.slane %v1865_v27, %v5744_v21  ;;  %v1880_v45 = vrot.slane %v4023_v15, %v5744_v21 }
 0x5a0   : > { %v1897_v7 = vcombine.low %v1872_v38, %v1880_v45 }
 0x5a1   : > { %1725 = vrot.lane.b32.xlu1 %v5901_v18, %s5045_s0 }
 0x5a2   : > { %v1905_v58 = vrot.slane %v1897_v7, %v5747_v28 }
 0x5be   : > { %v2237_v51 = vpop.xlane.xlu1 %2236 }
 0x5bf   : > { %v2245_v52 = vsub.f32 %v5894_v1, %v2237_v51  ;;  %v1760_v1 = vrot.slane %v1746_v63, %v5744_v21 }
 0x5c1   : > { %v2260_v54 = vmul.f32 1.442695, %v2245_v52  ;;  %v1777_v20 = vcombine.low %v1744_v17, %v1760_v1  ;;  %v1778_v62 = vcombine.high %v1744_v17, %v1760_v1 }
 0x5c2   : > { %v1720_v8 = vpop.permute.xlu1 %1719 }
 0x5c3   : > { %4604 = vpow2.f32 %v2260_v54  ;;  %v1785_v19 = vrot.slane %v1777_v20, %v5747_v28  ;;  %v1792_v25 = vrot.slane %v1778_v62, %v5747_v28  ;;  %v1797_v29 = vcombine.low %v5901_v18, %v1720_v8 }
 0x5c4   : > { %v1798_v10 = vcombine.high %v5901_v18, %v1720_v8  ;;  %v1898_v20 = vcombine.high %v1872_v38, %v1880_v45 }
 0x5c5   : > { %2278 = vadd.xlane.f32.xlu1 %v2277_v60  ;;  %v1881_v30 = vcombine.low %v1785_v19, %v1792_v25  ;;  %v4024_v33 = vcombine.high %v1785_v19, %v1792_v25  ;;  %v1805_v39 = vrot.slane %v1797_v29, %v5744_v21 }
 0x5c6   : > { %v1812_v41 = vrot.slane %v1798_v10, %v5744_v21 }
 0x5c7   : > { %v1888_v46 = vrot.slane %v1881_v30, %v5744_v21  ;;  %v1896_v47 = vrot.slane %v4024_v33, %v5744_v21  ;;  %v1912_v30 = vrot.slane %v1898_v20, %v5747_v28 }
 0x5c9   : > { %v1913_v11 = vcombine.low %v1888_v46, %v1896_v47  ;;  %v1914_v62 = vcombine.high %v1888_v46, %v1896_v47 }
 0x5cb   : > { %v1921_v4 = vrot.slane %v1913_v11, %v5747_v28  ;;  %v1928_v33 = vrot.slane %v1914_v62, %v5747_v28 }
 0x5cd   : > { %v5950_v3 = vpop.eup %4604 }
 0x5ce   : > { %v2283_v5 = vsel %vm2213_vm3, %v5950_v3, 0.0 }
 0x5cf   : > { %2284 = vadd.xlane.f32.xlu0 %v2283_v5 }
 0x611   : > { %v2264_v14 = vpop.xlane.xlu0 %2263 }
 0x612   : > { %4606 = vrcp.f32 %v2264_v14 }
 0x613   : > { %v2267_v22 = vpop.xlane.xlu1 %2266 }
 0x614   : > { %4608 = vrcp.f32 %v2267_v22 }
 0x619   : > { %v2270_v42 = vpop.xlane.xlu0 %2269 }
 0x61c   : > { %v4607_v17 = vpop.eup %4606 }
 0x61d   : > { %v2273_v26 = vpop.xlane.xlu1 %2272  ;;  %v2294_v46 = vmul.f32 %v4607_v17, %v5918_v13 }
 0x61e   : > { %4610 = vrcp.f32 %v2273_v26  ;;  %v4609_v22 = vpop.eup %4608 }
 0x61f   : > { %4612 = vrcp.f32 %v2270_v42 }
 0x621   : > { %v1726_v34 = vpop.permute.xlu1 %1725  ;;  %v2276_v13 = vpop.xlane.xlu0 %2275 }
 0x622   : > { %v1813_v35 = vcombine.low %v1714_v49, %v1726_v34  ;;  %v1814_v37 = vcombine.high %v1714_v49, %v1726_v34  ;;  %v1929_v34 = vcombine.low %v1905_v58, %v1921_v4  ;;  %4614 = vrcp.f32 %v2276_v13 }
 0x624   : > { %v1821_v44 = vrot.slane %v1813_v35, %v5744_v21  ;;  %v1828_v18 = vrot.slane %v1814_v37, %v5744_v21  ;;  %v1930_v37 = vcombine.high %v1905_v58, %v1921_v4 }
 0x626   : > { %v1829_v48 = vcombine.low %v1805_v39, %v1821_v44  ;;  %v1830_v49 = vcombine.high %v1805_v39, %v1821_v44  ;;  %v1845_v50 = vcombine.low %v1812_v41, %v1828_v18  ;;  %v1846_v51 = vcombine.high %v1812_v41, %v1828_v18 }
 0x627   : > { %v2295_v39 = vmul.f32 %v4609_v22, %v5922_v31 }
 0x628   : > { %v1837_v52 = vrot.slane %v1829_v48, %v5747_v28  ;;  %v1844_v54 = vrot.slane %v1830_v49, %v5747_v28  ;;  %v1853_v60 = vrot.slane %v1845_v50, %v5747_v28  ;;  %v1860_v5 = vrot.slane %v1846_v51, %v5747_v28  ;;  %v4611_v26 = vpop.eup %4610 }
 0x629   : > { %v4613_v15 = vpop.eup %4612  ;;  %v2297_v41 = vmul.f32 %v4611_v26, %v5930_v40  ;;  %v1931_v48 = vcombine.low %v1912_v30, %v1928_v33  ;;  %v1932_v49 = vcombine.high %v1912_v30, %v1928_v33  ;;  %v2302_v50 = vpack.c.bf16 %v2295_v39, %v2294_v46 }
 0x62a   : > { %v1933_v16 = vcombine.low %v1837_v52, %v1844_v54  ;;  %v4025_v61 = vcombine.high %v1837_v52, %v1844_v54  ;;  %v1949_v63 = vcombine.low %v1853_v60, %v1860_v5  ;;  %v4026_v12 = vcombine.high %v1853_v60, %v1860_v5  ;;  %v2282_v52 = vpop.xlane.xlu0 %2281 }
 0x62b   : > { %v2296_v47 = vmul.f32 %v4613_v15, %v5926_v36 }
 0x62c   : > { %v1940_v2 = vrot.slane %v1933_v16, %v5744_v21  ;;  %v1948_v0 = vrot.slane %v4025_v61, %v5744_v21  ;;  %v1956_v1 = vrot.slane %v1949_v63, %v5744_v21  ;;  %v1964_v8 = vrot.slane %v4026_v12, %v5744_v21  ;;  %v4615_v54 = vpop.eup %4614 }
 0x62d   : > { %v2303_v51 = vpack.c.bf16 %v2297_v41, %v2296_v47  ;;  %v2298_v7 = vmul.f32 %v4615_v54, %v5934_v43  ;;  %v4498_v43 = vld [vmem:[%s5580_s2] sm:$0xff]  }
 0x62e   : > { %v1965_v23 = vcombine.low %v1940_v2, %v1948_v0  ;;  %v1981_v24 = vcombine.low %v1956_v1, %v1964_v8  ;;  %v1966_v19 = vcombine.high %v1940_v2, %v1948_v0  ;;  %v1982_v25 = vcombine.high %v1956_v1, %v1964_v8  ;;  %v4500_v1 = vld [vmem:[%s5580_s2 + $0x10] sm:$0xff]   ;;  %v4503_v8 = vld [vmem:[%s5580_s2 + $0x28] sm:$0xff]  }
 0x630   : > { %v1973_v27 = vrot.slane %v1965_v23, %v5747_v28  ;;  %v1989_v29 = vrot.slane %v1981_v24, %v5747_v28  ;;  %v1980_v10 = vrot.slane %v1966_v19, %v5747_v28  ;;  %v1996_v14 = vrot.slane %v1982_v25, %v5747_v28 }
 0x632   : > { %v1997_v35 = vcombine.low %v1973_v27, %v1989_v29  ;;  %v1998_v38 = vcombine.high %v1973_v27, %v1989_v29  ;;  %v1999_v18 = vcombine.low %v1980_v10, %v1996_v14  ;;  %v2000_v45 = vcombine.high %v1980_v10, %v1996_v14 }
 0x634   : > { %v2001_v42 = vpack.c.bf16 %v1997_v35, %v1929_v34  ;;  %v2002_v44 = vpack.c.bf16 %v1998_v38, %v1930_v37  ;;  %v2003_v31 = vpack.c.bf16 %v1999_v18, %v1931_v48  ;;  %v2004_v40 = vpack.c.bf16 %v2000_v45, %v1932_v49 }
 0x636   : > { %4249 = vmatpush3.bf16.msra.mxu0 %v2001_v42  ;;  %4255 = vmatpush3.bf16.msra.mxu1 %v2002_v44 }
 0x637   : > { %4260 = vmatprep.subr.bf16.mxu0 %v5040_v6  ;;  %4266 = vmatprep.subr.bf16.mxu1 %v5040_v6 }
 0x639   : > { %4251 = vmatmul.mubr.msk.bf16.vlgmr.msra.gmra.mrb[4].mxu0 %vm2213_vm3, %v2302_v50  ;;  %4257 = vmatmul.mubr.msk.bf16.vlgmr.msra.gmra.mrb[20].mxu1 %vm2213_vm3, %v2303_v51 }
 0x63a   : > { %4261 = vmatpush3.bf16.msra.mxu0 %v2003_v31  ;;  %4267 = vmatpush3.bf16.msra.mxu1 %v2004_v40 }
 0x63b   : > { %4262 = vmatprep.mubr.msk.bf16.mxu0 %vm5042_vm0, %v5040_v6  ;;  %4268 = vmatprep.mubr.msk.bf16.mxu1 %vm5042_vm0, %v5040_v6 }
 0x63c   : > { %4272 = vmatprep.subr.bf16.mxu0 %v5040_v6 }
 0x652   : > { %v2279_v36 = vpop.xlane.xlu1 %2278 }
 0x653   : > { %4616 = vrcp.f32 %v2279_v36 }
 0x654   : > { %4618 = vrcp.f32 %v2282_v52 }
 0x65c   : > { %v2285_v60 = vpop.xlane.xlu0 %2284 }
 0x65d   : > { %v4617_v5 = vpop.eup %4616  ;;  %4620 = vrcp.f32 %v2285_v60 }
 0x65e   : > { %v2299_v11 = vmul.f32 %v4617_v5, %v5946_v53  ;;  %v4619_v61 = vpop.eup %4618  ;;  %v4499_v53 = vld [vmem:[%s5580_s2 + $0x8] sm:$0xff]  }
 0x65f   : > { %v2300_v12 = vmul.f32 %v4619_v61, %v5938_v55  ;;  %v4501_v55 = vld [vmem:[%s5580_s2 + $0x18] sm:$0xff]  }
 0x660   : > { %v2304_v16 = vpack.c.bf16 %v2299_v11, %v2298_v7 }
 0x662   : > { %4263 = vmatmul.mubr.msk.bf16.vlgmr.msra.gmra.mrb[8].mxu0 %vm2213_vm3, %v2304_v16 }
 0x663   : > { %4288 = vmatprep.mubr.msk.bf16.mxu0 %vm5042_vm0, %v5040_v6  ;;  %4273 = vmatpush3.bf16.msra.mxu0 %v4498_v43 }
 0x664   : > { %4274 = vmatprep.subr.bf16.mxu0 %v5040_v6 }
 0x667   : > { %v4621_v63 = vpop.eup %4620  ;;  %4275 = vmatpush3.bf16.msra.mxu0 %v4499_v53 }
 0x668   : > { %v2301_v2 = vmul.f32 %v4621_v63, %v5950_v3  ;;  %4276 = vmatprep.subr.bf16.mxu0 %v5040_v6  ;;  %v4502_v3 = vld [vmem:[%s5580_s2 + $0x20] sm:$0xff]  }
 0x66a   : > { %v2305_v0 = vpack.c.bf16 %v2301_v2, %v2300_v12 }
 0x66b   : > { %4277 = vmatpush3.bf16.msra.mxu0 %v4500_v1 }
 0x66c   : > { %4269 = vmatmul.mubr.msk.bf16.vlgmr.msra.gmra.mrb[24].mxu1 %vm2213_vm3, %v2305_v0  ;;  %4278 = vmatprep.subr.bf16.mxu0 %v5040_v6 }
 0x66d   : > { %3188 = vmatprep.mubr.bf16.mxu1 %v5041_v32 }
 0x66f   : > { %4279 = vmatpush3.bf16.msra.mxu0 %v4501_v55 }
 0x670   : > { %4280 = vmatprep.subr.bf16.mxu0 %v5040_v6 }
 0x673   : > { %4281 = vmatpush3.bf16.msra.mxu0 %v4502_v3 }
 0x674   : > { %4282 = vmatprep.subr.bf16.mxu0 %v5040_v6 }
 0x677   : > { %4283 = vmatpush3.bf16.msra.mxu0 %v4503_v8 }
 0x678   : > { %4284 = vmatprep.subr.bf16.mxu0 %v5040_v6 }
 0x70c   : > { %v2343_v17 = vpop.f32.mrb[4].mxu0  ;;  %v2387_v58 = vpop.f32.mrb[20].mxu1 }
 0x70d   : > { %v4252_v4 = vpop.f32.mrb[5].mxu0  ;;  %v4258_v20 = vpop.f32.mrb[21].mxu1 }
 0x70e   : > { %v2346_v62 = vpop.f32.mrb[6].mxu0  ;;  %v2390_v22 = vpop.f32.mrb[22].mxu1 }
 0x70f   : > { %v4253_v23 = vpop.f32.mrb[7].mxu0  ;;  %v4259_v24 = vpop.f32.mrb[23].mxu1 }
 0x735   : > { %v2431_v19 = vpop.f32.mrb[8].mxu0 }
 0x736   : > { %v2482_v25 = vcombine.low %v2343_v17, %v2431_v19  ;;  %v2483_v26 = vcombine.high %v2343_v17, %v2431_v19  ;;  %v4264_v27 = vpop.f32.mrb[9].mxu0  ;;  %v4504_v19 = vld [vmem:[%s5580_s2 + $0x30] sm:$0xff]  }
 0x737   : > { %v2434_v29 = vpop.f32.mrb[10].mxu0  ;;  %4285 = vmatpush3.bf16.msra.mxu0 %v4504_v19  ;;  %v4514_v19 = vld [vmem:[%s5589_s21 + $0x24] ss:$16 sps:$4 sm:$0xff]  }
 0x738   : > { %v2550_v10 = vcombine.low %v2346_v62, %v2434_v29  ;;  %v2551_v14 = vcombine.high %v2346_v62, %v2434_v29  ;;  %v4265_v15 = vpop.f32.mrb[11].mxu0  ;;  %v2490_v37 = vrot.slane %v2482_v25, %v5744_v21  ;;  %v2497_v38 = vrot.slane %v2483_v26, %v5744_v21  ;;  %4286 = vmatprep.subr.bf16.mxu0 %v5040_v6 }
 0x73a   : > { %v2558_v50 = vrot.slane %v2550_v10, %v5744_v21  ;;  %v2565_v51 = vrot.slane %v2551_v14, %v5744_v21 }
 0x73f   : > { %v2475_v30 = vpop.f32.mrb[24].mxu1 }
 0x740   : > { %v2498_v33 = vcombine.low %v2387_v58, %v2475_v30  ;;  %v2499_v34 = vcombine.high %v2387_v58, %v2475_v30  ;;  %v4270_v35 = vpop.f32.mrb[25].mxu1 }
 0x741   : > { %v2478_v39 = vpop.f32.mrb[26].mxu1 }
 0x742   : > { %v2506_v41 = vrot.slane %v2498_v33, %v5744_v21  ;;  %v2513_v42 = vrot.slane %v2499_v34, %v5744_v21  ;;  %v2566_v44 = vcombine.low %v2390_v22, %v2478_v39  ;;  %v2567_v18 = vcombine.high %v2390_v22, %v2478_v39  ;;  %v4271_v45 = vpop.f32.mrb[27].mxu1 }
 0x744   : > { %v2514_v46 = vcombine.low %v2490_v37, %v2506_v41  ;;  %v2515_v47 = vcombine.high %v2490_v37, %v2506_v41  ;;  %v2530_v48 = vcombine.low %v2497_v38, %v2513_v42  ;;  %v2531_v49 = vcombine.high %v2497_v38, %v2513_v42 }
 0x745   : > { %v2574_v31 = vrot.slane %v2566_v44, %v5744_v21  ;;  %v2581_v40 = vrot.slane %v2567_v18, %v5744_v21 }
 0x746   : > { %v2522_v13 = vrot.slane %v2514_v46, %v5747_v28  ;;  %v2529_v36 = vrot.slane %v2515_v47, %v5747_v28  ;;  %v2538_v52 = vrot.slane %v2530_v48, %v5747_v28  ;;  %v2545_v54 = vrot.slane %v2531_v49, %v5747_v28  ;;  %v4505_v46 = vld [vmem:[%s5580_s2 + $0x38] sm:$0xff]  }
 0x747   : > { %v2582_v60 = vcombine.low %v2558_v50, %v2574_v31  ;;  %v2583_v5 = vcombine.high %v2558_v50, %v2574_v31  ;;  %v2598_v7 = vcombine.low %v2565_v51, %v2581_v40  ;;  %v2599_v11 = vcombine.high %v2565_v51, %v2581_v40  ;;  %4287 = vmatpush3.bf16.msra.mxu0 %v4505_v46  ;;  %v4535_v46 = vld [vmem:[%s5589_s21 + $0x8c] ss:$16 sps:$4 sm:$0xff]  }
 0x748   : > { %v2618_v16 = vcombine.low %v2522_v13, %v2529_v36  ;;  %v4035_v61 = vcombine.high %v2522_v13, %v2529_v36  ;;  %v2634_v63 = vcombine.low %v2538_v52, %v2545_v54  ;;  %v4036_v12 = vcombine.high %v2538_v52, %v2545_v54 }
 0x749   : > { %v2590_v2 = vrot.slane %v2582_v60, %v5747_v28  ;;  %v2597_v0 = vrot.slane %v2583_v5, %v5747_v28  ;;  %v2606_v43 = vrot.slane %v2598_v7, %v5747_v28  ;;  %v2613_v53 = vrot.slane %v2599_v11, %v5747_v28 }
 0x74a   : > { %v2625_v1 = vrot.slane %v2618_v16, %v5744_v21  ;;  %v2633_v55 = vrot.slane %v4035_v61, %v5744_v21  ;;  %v2641_v3 = vrot.slane %v2634_v63, %v5744_v21  ;;  %v2649_v8 = vrot.slane %v4036_v12, %v5744_v21 }
 0x74b   : > { %v2686_v17 = vcombine.low %v2590_v2, %v2597_v0  ;;  %v4037_v58 = vcombine.high %v2590_v2, %v2597_v0  ;;  %v2702_v4 = vcombine.low %v2606_v43, %v2613_v53  ;;  %v4038_v20 = vcombine.high %v2606_v43, %v2613_v53  ;;  %v4039_v43 = vld [vmem:[%s6405_s27] ss:$0 sm:$0xff] }
 0x74c   : > { %v2651_v62 = vcombine.high %v2625_v1, %v2633_v55  ;;  %v2667_v22 = vcombine.high %v2641_v3, %v2649_v8  ;;  %v2650_v23 = vcombine.low %v2625_v1, %v2633_v55  ;;  %v2666_v24 = vcombine.low %v2641_v3, %v2649_v8  ;;  %v4642_v8 = vld [vmem:[%s5633_s25] sm:$0xff] }
 0x74d   : > { %v2693_v25 = vrot.slane %v2686_v17, %v5744_v21  ;;  %v2701_v26 = vrot.slane %v4037_v58, %v5744_v21  ;;  %v2709_v27 = vrot.slane %v2702_v4, %v5744_v21  ;;  %v2717_v29 = vrot.slane %v4038_v20, %v5744_v21  ;;  %v4643_v20 = vld [vmem:[%s5633_s25 + $0x8] sm:$0xff] }
 0x74e   : > { %v2665_v10 = vrot.slane %v2651_v62, %v5747_v28  ;;  %v2681_v14 = vrot.slane %v2667_v22, %v5747_v28  ;;  %v2658_v15 = vrot.slane %v2650_v23, %v5747_v28  ;;  %v2674_v30 = vrot.slane %v2666_v24, %v5747_v28  ;;  %v4508_v22 = vld [vmem:[%s5589_s21 + $0x4] ss:$16 sps:$4 sm:$0xff]   ;;  %v4509_v23 = vld [vmem:[%s5589_s21 + $0x8] ss:$16 sps:$4 sm:$0xff]   ;;  %v4511_v24 = vld [vmem:[%s5589_s21 + $0xc] ss:$16 sps:$4 sm:$0xff]  }
 0x74f   : > { %v2719_v33 = vcombine.high %v2693_v25, %v2701_v26  ;;  %v2735_v34 = vcombine.high %v2709_v27, %v2717_v29  ;;  %v2718_v35 = vcombine.low %v2693_v25, %v2701_v26  ;;  %v2734_v37 = vcombine.low %v2709_v27, %v2717_v29  ;;  %3156 = vmatprep.subr.bf16.mxu1 %v4508_v22  ;;  %v4517_v25 = vld [vmem:[%s5589_s21 + $0x2c] ss:$16 sps:$4 sm:$0xff]   ;;  %v4512_v26 = vld [vmem:[%s5589_s21 + $0x20] ss:$16 sps:$4 sm:$0xff]   ;;  %v4515_v27 = vld [vmem:[%s5589_s21 + $0x28] ss:$16 sps:$4 sm:$0xff]  }
 0x750   : > { %v2684_v38 = vcombine.low %v2665_v10, %v2681_v14  ;;  %v2682_v39 = vcombine.low %v2658_v15, %v2674_v30  ;;  %v2683_v41 = vcombine.high %v2658_v15, %v2674_v30  ;;  %v2685_v21 = vcombine.high %v2665_v10, %v2681_v14  ;;  %3199 = vmatprep.subr.bf16.mxu0 %v4511_v24  ;;  %v4556_v22 = vld [vmem:[%s5597_s26] sm:$0xff]   ;;  %v4558_v24 = vld [vmem:[%s5597_s26 + $0x48] sm:$0xff]  }
 0x751   : > { %v2733_v42 = vrot.slane %v2719_v33, %v5747_v28  ;;  %v2749_v44 = vrot.slane %v2735_v34, %v5747_v28  ;;  %v2726_v18 = vrot.slane %v2718_v35, %v5747_v28  ;;  %v2742_v45 = vrot.slane %v2734_v37, %v5747_v28  ;;  %v4518_v37 = vld [vmem:[%s5589_s21 + $0x40] ss:$16 sps:$4 sm:$0xff]  }
 0x753   : > { %v2752_v47 = vcombine.low %v2733_v42, %v2749_v44  ;;  %v2751_v48 = vcombine.high %v2726_v18, %v2742_v45  ;;  %v2750_v49 = vcombine.low %v2726_v18, %v2742_v45  ;;  %v2753_v50 = vcombine.high %v2733_v42, %v2749_v44  ;;  %v4526_v42 = vld [vmem:[%s5589_s21 + $0x64] ss:$16 sps:$4 sm:$0xff]   ;;  %v4527_v44 = vld [vmem:[%s5589_s21 + $0x68] ss:$16 sps:$4 sm:$0xff]   ;;  %v4529_v18 = vld [vmem:[%s5589_s21 + $0x6c] ss:$16 sps:$4 sm:$0xff]  }
 0x754   : > { %v4532_v45 = vld [vmem:[%s5589_s21 + $0x84] ss:$16 sps:$4 sm:$0xff]  }
 0x755   : > { %v4456_v51 = vpack.i.bf16 %v2752_v47, %v2684_v38  ;;  %v4451_v6 = vpack.i.bf16 %v2751_v48, %v2683_v41  ;;  %v4461_v31 = vpack.i.bf16 %v2753_v50, %v2685_v21  ;;  %v4520_v38 = vld [vmem:[%s5589_s21 + $0x44] ss:$16 sps:$4 sm:$0xff]   ;;  %v4523_v41 = vld [vmem:[%s5589_s21 + $0x4c] ss:$16 sps:$4 sm:$0xff]   ;;  %v4524_v21 = vld [vmem:[%s5589_s21 + $0x60] ss:$16 sps:$4 sm:$0xff]  }
 0x756   : > { %v4530_v47 = vld [vmem:[%s5589_s21 + $0x80] ss:$16 sps:$4 sm:$0xff]   ;;  %v4533_v48 = vld [vmem:[%s5589_s21 + $0x88] ss:$16 sps:$4 sm:$0xff]   ;;  %v4541_v50 = vld [vmem:[%s5589_s21 + $0xac] ss:$16 sps:$4 sm:$0xff]  }
 0x757   : > { %4457 = vrot.lane.b32.xlu1 %v4456_v51, %s5043_s28  ;;  %4452 = vrot.lane.b32.xlu0 %v4451_v6, %s5045_s0  ;;  %v4536_v51 = vld [vmem:[%s5589_s21 + $0xa0] ss:$16 sps:$4 sm:$0xff]   ;;  %v4539_v6 = vld [vmem:[%s5589_s21 + $0xa8] ss:$16 sps:$4 sm:$0xff]  }
 0x75b   : > { %4462 = vrot.lane.b32.xlu1 %v4461_v31, %s5044_s7  ;;  %v4544_v31 = vld [vmem:[%s5589_s21 + $0xc4] ss:$16 sps:$4 sm:$0xff]  }
 0x7c9   : > { %v4458_v40 = vpop.permute.xlu1 %4457  ;;  %v4453_v13 = vpop.permute.xlu0 %4452 }
 0x7ca   : > { %v4455_v36 = vunpack.i.h.bf16 %v4453_v13  ;;  %v4454_v52 = vunpack.i.l.bf16 %v4453_v13  ;;  %v4460_v28 = vunpack.i.h.bf16 %v4458_v40  ;;  %v4459_v54 = vunpack.i.l.bf16 %v4458_v40  ;;  %v4547_v40 = vld [vmem:[%s5589_s21 + $0xcc] ss:$16 sps:$4 sm:$0xff]   ;;  %v4542_v13 = vld [vmem:[%s5589_s21 + $0xc0] ss:$16 sps:$4 sm:$0xff]  }
 0x7cc   : > { %v2778_v60 = vsel %vm2005_vm1, %v2682_v39, %v4454_v52  ;;  %v2779_v5 = vsel %vm2005_vm1, %v2750_v49, %v4455_v36  ;;  %v4521_v39 = vld [vmem:[%s5589_s21 + $0x48] ss:$16 sps:$4 sm:$0xff]   ;;  %v4538_v49 = vld [vmem:[%s5589_s21 + $0xa4] ss:$16 sps:$4 sm:$0xff]  }
 0x7cd   : > { %v4463_v7 = vpop.permute.xlu1 %4462  ;;  %v2781_v61 = vsel %vm2780_vm5, %v2778_v60, %v4459_v54  ;;  %v2782_v63 = vsel %vm2780_vm5, %v2779_v5, %v4460_v28  ;;  %v4545_v36 = vld [vmem:[%s5589_s21 + $0xc8] ss:$16 sps:$4 sm:$0xff]   ;;  %v4550_v52 = vld [vmem:[%s5589_s21 + $0xe4] ss:$16 sps:$4 sm:$0xff]   ;;  %v4553_v28 = vld [vmem:[%s5589_s21 + $0xec] ss:$16 sps:$4 sm:$0xff]  }
 0x7ce   : > { %v4465_v11 = vunpack.i.h.bf16 %v4463_v7  ;;  %v4464_v16 = vunpack.i.l.bf16 %v4463_v7  ;;  %v4548_v54 = vld [vmem:[%s5589_s21 + $0xe0] ss:$16 sps:$4 sm:$0xff]   ;;  %v4551_v60 = vld [vmem:[%s5589_s21 + $0xe8] ss:$16 sps:$4 sm:$0xff]  }
 0x7d0   : > { %v2784_v12 = vsel %vm2783_vm6, %v2781_v61, %v4464_v16  ;;  %v2785_v2 = vsel %vm2783_vm6, %v2782_v63, %v4465_v11 }
 0x7d1   : > { %v2786_v0 = vpack.c.bf16 %v2785_v2, %v2784_v12 }
 0x7d3   : > { %4289 = vmatmul.mubr.bf16.vlgmr.msra.gmra.mrb[12].mxu0 %v2786_v0  ;;  %v4048_v0 = vld [vmem:[%s797_s5] ss:$0 sm:$0xff]  ;;  %s6408_s5 = scalar_lea.vmem [#allocation14], %s5570_s14 }
 0x7d4   : > { %3231 = vmatprep.mubr.bf16.mxu0 %v5041_v32  ;;  %v4506_v32 = vld [vmem:[%s5589_s21] ss:$16 sps:$4 sm:$0xff]   ;;  %3200 = vmatpush1.bf16.msra.mxu0 %v4509_v23  ;;  %v4557_v23 = vld [vmem:[%s5597_s26 + $0x80] sm:$0xff]  }
 0x7d5   : > { %3157 = vmatpush1.bf16.msra.mxu1 %v4506_v32  ;;  %3201 = vmatprep.subr.bf16.mxu0 %v4517_v25  ;;  %v4555_v32 = vld [vmem:[%s5597_s26 + $0xc0] sm:$0xff]   ;;  %v4560_v25 = vld [vmem:[%s5597_s26 + $0x8] sm:$0xff]  }
 0x7d6   : > { %3158 = vmatprep.subr.bf16.mxu1 %v4514_v19  ;;  %v4559_v19 = vld [vmem:[%s5597_s26 + $0xc8] sm:$0xff]  }
 0x7d8   : > { %3202 = vmatpush1.bf16.msra.mxu0 %v4515_v27  ;;  %v4562_v27 = vld [vmem:[%s5597_s26 + $0x50] sm:$0xff]  }
 0x7d9   : > { %3159 = vmatpush1.bf16.msra.mxu1 %v4512_v26  ;;  %3203 = vmatprep.subr.bf16.mxu0 %v4523_v41  ;;  %v4561_v26 = vld [vmem:[%s5597_s26 + $0x88] sm:$0xff]  }
 0x7da   : > { %3160 = vmatprep.subr.bf16.mxu1 %v4520_v38  ;;  %v4572_v38 = vld [vmem:[%s5597_s26 + $0x20] sm:$0xff]   ;;  %v4574_v41 = vld [vmem:[%s5597_s26 + $0x68] sm:$0xff]  }
 0x7dc   : > { %3204 = vmatpush1.bf16.msra.mxu0 %v4521_v39  ;;  %v4573_v39 = vld [vmem:[%s5597_s26 + $0xa0] sm:$0xff]  }
 0x7dd   : > { %3161 = vmatpush1.bf16.msra.mxu1 %v4518_v37  ;;  %3205 = vmatprep.subr.bf16.mxu0 %v4529_v18  ;;  %v4571_v37 = vld [vmem:[%s5597_s26 + $0xe0] sm:$0xff]   ;;  %v4578_v18 = vld [vmem:[%s5597_s26 + $0x70] sm:$0xff]  }
 0x7de   : > { %3162 = vmatprep.subr.bf16.mxu1 %v4526_v42  ;;  %v4576_v42 = vld [vmem:[%s5597_s26 + $0x28] sm:$0xff]  }
 0x7e0   : > { %3206 = vmatpush1.bf16.msra.mxu0 %v4527_v44  ;;  %v4577_v44 = vld [vmem:[%s5597_s26 + $0xa8] sm:$0xff]  }
 0x7e1   : > { %3163 = vmatpush1.bf16.msra.mxu1 %v4524_v21  ;;  %3207 = vmatprep.subr.bf16.mxu0 %v4535_v46  ;;  %v4575_v21 = vld [vmem:[%s5597_s26 + $0xe8] sm:$0xff]   ;;  %v4580_v46 = vld [vmem:[%s5597_s26 + $0x30] sm:$0xff]  }
 0x7e2   : > { %3164 = vmatprep.subr.bf16.mxu1 %v4532_v45  ;;  %v4579_v45 = vld [vmem:[%s5597_s26 + $0xf0] sm:$0xff]  }
 0x7e4   : > { %3208 = vmatpush1.bf16.msra.mxu0 %v4533_v48  ;;  %v4582_v48 = vld [vmem:[%s5597_s26 + $0x78] sm:$0xff]  }
 0x7e5   : > { %3165 = vmatpush1.bf16.msra.mxu1 %v4530_v47  ;;  %3209 = vmatprep.subr.bf16.mxu0 %v4541_v50  ;;  %v4581_v47 = vld [vmem:[%s5597_s26 + $0xb0] sm:$0xff]   ;;  %v4584_v50 = vld [vmem:[%s5597_s26 + $0x38] sm:$0xff]  }
 0x7e6   : > { %3166 = vmatprep.subr.bf16.mxu1 %v4538_v49  ;;  %v4583_v49 = vld [vmem:[%s5597_s26 + $0xf8] sm:$0xff]  }
 0x7e8   : > { %3210 = vmatpush1.bf16.msra.mxu0 %v4539_v6  ;;  %v2974_v6 = vld [vmem:[%s5591_s23] sm:$0xf]  ;;  %s3681_s23 = sshll.u32 %s5633_s25, 4  ;;  %s6221_s23 = int_to_ptr.vmem [resolvable:$true] %s3681_s23 }
 0x7e9   : > { %3167 = vmatpush1.bf16.msra.mxu1 %v4536_v51  ;;  %3211 = vmatprep.subr.bf16.mxu0 %v4547_v40  ;;  %v4585_v51 = vld [vmem:[%s5597_s26 + $0xb8] sm:$0xff]   ;;  %v2979_v40 = vrot.slane %v2974_v6, %v890_v59  ;;  %s4884_s15 = scalar_lea.vmem %s6221_s23, 256  ;;  %p4891_p12 = scmp.lt.s32.totalorder %s6221_s23, %s4889_s4 }
 0x7ea   : > { %3168 = vmatprep.subr.bf16.mxu1 %v4544_v31  ;;  %v2990_v31 = vsub.s32 3, %v5704_v56  ;;  %p4885_p2 = scmp.ne.s32.totalorder %s6221_s23, %s4884_s15  ;;  %p4892_p4 = scmp.lt.s32.totalorder %s4890_s9, %s4884_s15 }
 0x7ec   : > { %3212 = vmatpush1.bf16.msra.mxu0 %v4545_v36  ;;  %v2983_v36 = vrot.slane %v2974_v6, %v894_v57  ;;  %p4886_p8 = pnand %p4885_p2, %p6411_p0  ;;  %p4893_p10 = por %p4892_p4, %p4891_p12 }
 0x7ed   : > { %3169 = vmatpush1.bf16.msra.mxu1 %v4542_v13  ;;  %3213 = vmatprep.subr.bf16.mxu0 %v4553_v28  ;;  %v2987_v13 = vrot.slane %v2974_v6, %v898_v9 }
 0x7ee   : > { %3170 = vmatprep.subr.bf16.mxu1 %v4550_v52  ;;  %v2991_v52 = vrot.slane %v2974_v6, %v2990_v31  ;;  %p4887_p9 = pneg %p4886_p8 }
 0x7f0   : > { %3214 = vmatpush1.bf16.msra.mxu0 %v4551_v60  ;;  %p4894_p6 = pnand %p4893_p10, %p4887_p9 }
 0x7f1   : > { %3171 = vmatpush1.bf16.msra.mxu1 %v4548_v54  ;;  %4182 = vmatprep.subr.bf16.mxu0 %v4555_v32 }
 0x8a6   : > { %v2892_v53 = vpop.f32.mrb[12].mxu0 }
 0x8a7   : > { %v2893_v1 = vadd.f32 %v4039_v43, %v2892_v53  ;;  %v4290_v55 = vpop.f32.mrb[13].mxu0 }
 0x8a8   : > { %v2895_v3 = vpop.f32.mrb[14].mxu0  ;;  %v4049_v55 = vld [vmem:[%s800_s29] ss:$0 sm:$0xff]  ;;  %s6409_s29 = sld [smem:[#allocation29_spill]] }
 0x8a9   : > { %v6068_v17 = vadd.f32 %v4642_v8, %v2893_v1  ;;  %v2896_v58 = vadd.f32 %v4039_v43, %v2895_v3  ;;  %v4291_v4 = vpop.f32.mrb[15].mxu0 }
 0x8ab   : > { %v6071_v62 = vadd.f32 %v4643_v20, %v2896_v58  ;;  %2903 = vadd.xlane.f32.xlu1 %v6068_v17  ;;  %v4554_v20 = vld [vmem:[%s5597_s26 + $0x40] sm:$0xff]  }
 0x8ac   : > { %4160 = vmatprep.subr.bf16.mxu1 %v4554_v20 }
 0x8ad   : > { %2905 = vadd.xlane.f32.xlu0 %v6071_v62 }
 0x8ae   : > { %s4125_s14 = sshll.u32 %s6409_s29, 8 }
 0x8af   : > { %s6219_s19 = scalar_lea.hbm %s6410_s22, %s4125_s14 }
 0x938   : > { %v2904_v29 = vpop.xlane.xlu1 %2903 }
 0x939   : > { %v2907_v10 = vmul.f32 0.0078125, %v2904_v29  ;;  %v4563_v29 = vld [vmem:[%s5597_s26 + $0xd0] sm:$0xff]  }
 0x93a   : > { %v2906_v14 = vpop.xlane.xlu0 %2905 }
 0x93b   : > { %v6084_v15 = vsub.f32 %v6068_v17, %v2907_v10  ;;  %v2908_v30 = vmul.f32 0.0078125, %v2906_v14  ;;  %v4564_v10 = vld [vmem:[%s5597_s26 + $0x10] sm:$0xff]  }
 0x93c   : > { %v4565_v14 = vld [vmem:[%s5597_s26 + $0x90] sm:$0xff]  }
 0x93d   : > { %v6087_v33 = vsub.f32 %v6071_v62, %v2908_v30  ;;  %v2911_v34 = vmul.f32 %v6084_v15, %v6084_v15  ;;  %v4567_v30 = vld [vmem:[%s5597_s26 + $0xd8] sm:$0xff]  }
 0x93f   : > { %2913 = vadd.xlane.f32.xlu0 %v2911_v34  ;;  %v2912_v35 = vmul.f32 %v6087_v33, %v6087_v33  ;;  %v4569_v34 = vld [vmem:[%s5597_s26 + $0x98] sm:$0xff]  }
 0x943   : > { %2915 = vadd.xlane.f32.xlu0 %v2912_v35  ;;  %v4570_v35 = vld [vmem:[%s5597_s26 + $0x60] sm:$0xff]  }
 0x9cc   : > { %v2914_v5 = vpop.xlane.xlu0 %2913 }
 0x9cd   : > { %v2917_v7 = vmul.f32 0.0078125, %v2914_v5 }
 0x9cf   : > { %v2919_v11 = vadd.f32 1e-05, %v2917_v7 }
 0x9d0   : > { %v2916_v16 = vpop.xlane.xlu0 %2915 }
 0x9d1   : > { %4622 = vrsqrt.f32 %v2919_v11  ;;  %v2918_v61 = vmul.f32 0.0078125, %v2916_v16 }
 0x9d3   : > { %v2920_v63 = vadd.f32 1e-05, %v2918_v61 }
 0x9d5   : > { %4624 = vrsqrt.f32 %v2920_v63 }
 0x9db   : > { %v4623_v12 = vpop.eup %4622 }
 0x9dc   : > { %v2923_v2 = vmul.f32 %v4623_v12, %v6084_v15  ;;  %v4566_v15 = vld [vmem:[%s5597_s26 + $0x58] sm:$0xff]  }
 0x9de   : > { %v2931_v1 = vmul.f32 %v4048_v0, %v2923_v2 }
 0x9df   : > { %v4625_v43 = vpop.eup %4624 }
 0x9e0   : > { %v2924_v53 = vmul.f32 %v4625_v43, %v6087_v33  ;;  %v2939_v8 = vadd.f32 %v4049_v55, %v2931_v1  ;;  %v4568_v33 = vld [vmem:[%s5597_s26 + $0x18] sm:$0xff]  }
 0x9e2   : > { %v2932_v3 = vmul.f32 %v4048_v0, %v2924_v53 }
 0x9e4   : > { %v2940_v58 = vadd.f32 %v4049_v55, %v2932_v3 }
 0x9e6   : > { %v2941_v4 = vpack.c.bf16 %v2940_v58, %v2939_v8 }
 0x9e8   : > { %3189 = vmatmul.mubr.bf16.vlgmr.msra.gmra.mrb[28].mxu1 %v2941_v4  ;;  %3232 = vmatmul.mubr.bf16.vlgmr.msra.gmra.mrb[16].mxu0 %v2941_v4 }
 0x9e9   : > { %4161 = vmatpush3.bf16.msra.mxu1 %v4556_v22  ;;  %4183 = vmatpush3.bf16.msra.mxu0 %v4557_v23 }
 0x9ea   : > { %4162 = vmatprep.subr.bf16.mxu1 %v4558_v24  ;;  %4184 = vmatprep.subr.bf16.mxu0 %v4559_v19 }
 0x9ed   : > { %4163 = vmatpush3.bf16.msra.mxu1 %v4560_v25  ;;  %4185 = vmatpush3.bf16.msra.mxu0 %v4561_v26 }
 0x9ee   : > { %4164 = vmatprep.subr.bf16.mxu1 %v4562_v27  ;;  %4186 = vmatprep.subr.bf16.mxu0 %v4563_v29 }
 0x9f1   : > { %4165 = vmatpush3.bf16.msra.mxu1 %v4564_v10  ;;  %4187 = vmatpush3.bf16.msra.mxu0 %v4565_v14 }
 0x9f2   : > { %4166 = vmatprep.subr.bf16.mxu1 %v4566_v15  ;;  %4188 = vmatprep.subr.bf16.mxu0 %v4567_v30 }
 0x9f5   : > { %4167 = vmatpush3.bf16.msra.mxu1 %v4568_v33  ;;  %4189 = vmatpush3.bf16.msra.mxu0 %v4569_v34 }
 0x9f6   : > { %4168 = vmatprep.subr.bf16.mxu1 %v4570_v35  ;;  %4190 = vmatprep.subr.bf16.mxu0 %v4571_v37 }
 0x9f9   : > { %4169 = vmatpush3.bf16.msra.mxu1 %v4572_v38  ;;  %4191 = vmatpush3.bf16.msra.mxu0 %v4573_v39 }
 0x9fa   : > { %4170 = vmatprep.subr.bf16.mxu1 %v4574_v41  ;;  %4192 = vmatprep.subr.bf16.mxu0 %v4575_v21 }
 0x9fd   : > { %4171 = vmatpush3.bf16.msra.mxu1 %v4576_v42  ;;  %4193 = vmatpush3.bf16.msra.mxu0 %v4577_v44 }
 0x9fe   : > { %4172 = vmatprep.subr.bf16.mxu1 %v4578_v18  ;;  %4194 = vmatprep.subr.bf16.mxu0 %v4579_v45 }
 0xa01   : > { %4173 = vmatpush3.bf16.msra.mxu1 %v4580_v46  ;;  %4195 = vmatpush3.bf16.msra.mxu0 %v4581_v47 }
 0xa02   : > { %4174 = vmatprep.subr.bf16.mxu1 %v4582_v48  ;;  %4196 = vmatprep.subr.bf16.mxu0 %v4583_v49 }
 0xa05   : > { %4175 = vmatpush3.bf16.msra.mxu1 %v4584_v50  ;;  %4197 = vmatpush3.bf16.msra.mxu0 %v4585_v51 }
 0xabb   : > { %v3190_v28 = vpop.f32.mrb[28].mxu1  ;;  %v3233_v54 = vpop.f32.mrb[16].mxu0 }
 0xabc   : > { %v6169_v60 = vadd.f32 %v3190_v28, %v2979_v40  ;;  %v6171_v5 = vadd.f32 %v3233_v54, %v2987_v13  ;;  %v3192_v7 = vpop.f32.mrb[29].mxu1  ;;  %v3235_v11 = vpop.f32.mrb[17].mxu0 }
 0xabd   : > { %v6173_v16 = vadd.f32 %v3192_v7, %v2983_v36  ;;  %v6175_v61 = vadd.f32 %v3235_v11, %v2991_v52  ;;  %v3194_v59 = vpop.f32.mrb[30].mxu1  ;;  %v3237_v63 = vpop.f32.mrb[18].mxu0 }
 0xabe   : > { %v3250_v9 = vmul.f32 0.044715, %v6169_v60  ;;  %v3252_v56 = vmul.f32 0.044715, %v6171_v5  ;;  %v3195_v57 = vadd.f32 %v3194_v59, %v2979_v40  ;;  %v3238_v12 = vadd.f32 %v3237_v63, %v2987_v13  ;;  %v3196_v2 = vpop.f32.mrb[31].mxu1  ;;  %v3239_v0 = vpop.f32.mrb[19].mxu0 }
 0xabf   : > { %v3251_v43 = vmul.f32 0.044715, %v6173_v16  ;;  %v3253_v53 = vmul.f32 0.044715, %v6175_v61  ;;  %v6181_v1 = vadd.f32 %v3196_v2, %v2983_v36  ;;  %v6183_v55 = vadd.f32 %v3239_v0, %v2991_v52 }
 0xac0   : > { %v3258_v3 = vmul.f32 %v3250_v9, %v6169_v60  ;;  %v3260_v8 = vmul.f32 %v3252_v56, %v6171_v5  ;;  %v3254_v58 = vmul.f32 0.044715, %v3195_v57  ;;  %v3256_v4 = vmul.f32 0.044715, %v3238_v12 }
 0xac1   : > { %v3259_v20 = vmul.f32 %v3251_v43, %v6173_v16  ;;  %v3261_v32 = vmul.f32 %v3253_v53, %v6175_v61  ;;  %v3255_v22 = vmul.f32 0.044715, %v6181_v1  ;;  %v3257_v23 = vmul.f32 0.044715, %v6183_v55 }
 0xac2   : > { %v3266_v24 = vmul.f32 %v3258_v3, %v6169_v60  ;;  %v3268_v19 = vmul.f32 %v3260_v8, %v6171_v5  ;;  %v3262_v25 = vmul.f32 %v3254_v58, %v3195_v57  ;;  %v3264_v26 = vmul.f32 %v3256_v4, %v3238_v12 }
 0xac3   : > { %v3267_v27 = vmul.f32 %v3259_v20, %v6173_v16  ;;  %v3269_v29 = vmul.f32 %v3261_v32, %v6175_v61  ;;  %v3263_v10 = vmul.f32 %v3255_v22, %v6181_v1  ;;  %v3265_v14 = vmul.f32 %v3257_v23, %v6183_v55 }
 0xac4   : > { %v3274_v15 = vadd.f32 %v3266_v24, %v6169_v60  ;;  %v3276_v30 = vadd.f32 %v3268_v19, %v6171_v5  ;;  %v3270_v33 = vmul.f32 %v3262_v25, %v3195_v57  ;;  %v3272_v34 = vmul.f32 %v3264_v26, %v3238_v12 }
 0xac5   : > { %v3271_v35 = vmul.f32 %v3263_v10, %v6181_v1  ;;  %v3273_v37 = vmul.f32 %v3265_v14, %v6183_v55  ;;  %v3275_v42 = vadd.f32 %v3267_v27, %v6173_v16  ;;  %v3277_v46 = vadd.f32 %v3269_v29, %v6175_v61 }
 0xac6   : > { %v3282_v38 = vmul.f32 0.7978846, %v3274_v15  ;;  %v3284_v39 = vmul.f32 0.7978846, %v3276_v30  ;;  %v3278_v41 = vadd.f32 %v3270_v33, %v3195_v57  ;;  %v3280_v21 = vadd.f32 %v3272_v34, %v3238_v12 }
 0xac7   : > { %v3279_v44 = vadd.f32 %v3271_v35, %v6181_v1  ;;  %v3283_v47 = vmul.f32 0.7978846, %v3275_v42  ;;  %v3281_v49 = vadd.f32 %v3273_v37, %v6183_v55  ;;  %v3285_v50 = vmul.f32 0.7978846, %v3277_v46 }
 0xac8   : > { %4626 = vtanh.f32 %v3282_v38  ;;  %v3286_v18 = vmul.f32 0.7978846, %v3278_v41  ;;  %v3288_v45 = vmul.f32 0.7978846, %v3280_v21  ;;  %v3242_v28 = vmul.f32 0.5, %v6169_v60 }
 0xac9   : > { %4628 = vtanh.f32 %v3284_v39  ;;  %v3287_v48 = vmul.f32 0.7978846, %v3279_v44  ;;  %v3289_v51 = vmul.f32 0.7978846, %v3281_v49  ;;  %v3246_v54 = vmul.f32 0.5, %v3195_v57 }
 0xaca   : > { %4630 = vtanh.f32 %v3286_v18  ;;  %v3244_v59 = vmul.f32 0.5, %v6171_v5  ;;  %v3248_v63 = vmul.f32 0.5, %v3238_v12  ;;  %v3243_v2 = vmul.f32 0.5, %v6173_v16 }
 0xacb   : > { %4632 = vtanh.f32 %v3288_v45  ;;  %v3247_v8 = vmul.f32 0.5, %v6181_v1  ;;  %v3245_v57 = vmul.f32 0.5, %v6175_v61  ;;  %v3249_v32 = vmul.f32 0.5, %v6183_v55  ;;  %v4082_v61 = vld [vmem:[%s6408_s5] ss:$0 sm:$0xff] }
 0xacc   : > { %4634 = vtanh.f32 %v3283_v47 }
 0xacd   : > { %4636 = vtanh.f32 %v3287_v48 }
 0xace   : > { %4638 = vtanh.f32 %v3285_v50 }
 0xacf   : > { %4640 = vtanh.f32 %v3289_v51 }
 0xad2   : > { %v4627_v6 = vpop.eup %4626 }
 0xad3   : > { %v4629_v31 = vpop.eup %4628  ;;  %v3298_v40 = vadd.f32 1.0, %v4627_v6 }
 0xad4   : > { %v4631_v13 = vpop.eup %4630  ;;  %v3300_v36 = vadd.f32 1.0, %v4629_v31 }
 0xad5   : > { %v4633_v52 = vpop.eup %4632  ;;  %v3302_v7 = vadd.f32 1.0, %v4631_v13  ;;  %v3306_v43 = vmul.f32 %v3298_v40, %v3242_v28 }
 0xad6   : > { %v4635_v11 = vpop.eup %4634  ;;  %v3304_v9 = vadd.f32 1.0, %v4633_v52  ;;  %v3308_v4 = vmul.f32 %v3300_v36, %v3244_v59 }
 0xad7   : > { %v4637_v56 = vpop.eup %4636  ;;  %v3299_v0 = vadd.f32 1.0, %v4635_v11  ;;  %v3310_v53 = vmul.f32 %v3302_v7, %v3246_v54 }
 0xad8   : > { %v4639_v3 = vpop.eup %4638  ;;  %v3303_v58 = vadd.f32 1.0, %v4637_v56  ;;  %v3312_v20 = vmul.f32 %v3304_v9, %v3248_v63 }
 0xad9   : > { %v4641_v60 = vpop.eup %4640  ;;  %v3301_v5 = vadd.f32 1.0, %v4639_v3  ;;  %v3314_v12 = vpack.c.bf16 %v3310_v53, %v3306_v43  ;;  %v3307_v22 = vmul.f32 %v3299_v0, %v3243_v2 }
 0xada   : > { %v3311_v23 = vmul.f32 %v3303_v58, %v3247_v8  ;;  %v3305_v16 = vadd.f32 1.0, %v4641_v60  ;;  %v3316_v24 = vpack.c.bf16 %v3312_v20, %v3308_v4 }
 0xadb   : > { %v3309_v25 = vmul.f32 %v3301_v5, %v3245_v57 }
 0xadc   : > { %v3315_v19 = vpack.c.bf16 %v3311_v23, %v3307_v22  ;;  %v3313_v26 = vmul.f32 %v3305_v16, %v3249_v32 }
 0xade   : > { %3613 = vmatprep.mubr.bf16.mxu1 %v3315_v19  ;;  %v3317_v1 = vpack.c.bf16 %v3313_v26, %v3309_v25 }
 0xadf   : > { %3614 = vmatmul.mubr.bf16.vlgmr.msra.gmra.mrb[32].mxu1 %v3314_v12 }
 0xae0   : > { %3654 = vmatprep.mubr.bf16.mxu0 %v3317_v1 }
 0xae1   : > { %3655 = vmatmul.mubr.bf16.vlgmr.msra.gmra.mrb[20].mxu0 %v3316_v24 }
 0xbb2   : > { %v4176_v27 = vpop.f32.mrb[32].mxu1 }
 0xbb3   : > { %v4177_v55 = vpop.f32.mrb[33].mxu1 }
 0xbb4   : > { %v4198_v29 = vpop.f32.mrb[20].mxu0  ;;  %v4178_v10 = vadd.f32 %v4177_v55, %v4176_v27  ;;  %v4179_v14 = vpop.f32.mrb[34].mxu1 }
 0xbb5   : > { %v4199_v15 = vpop.f32.mrb[21].mxu0  ;;  %v4180_v30 = vpop.f32.mrb[35].mxu1 }
 0xbb6   : > { %v3616_v33 = vadd.f32 %v4178_v10, %v4082_v61  ;;  %v4200_v34 = vadd.f32 %v4199_v15, %v4198_v29  ;;  %v4201_v35 = vpop.f32.mrb[22].mxu0  ;;  %v4181_v37 = vadd.f32 %v4180_v30, %v4179_v14 }
 0xbb7   : > { %v4202_v38 = vpop.f32.mrb[23].mxu0 }
 0xbb8   : > { %v3657_v39 = vadd.f32 %v4200_v34, %v3616_v33  ;;  %v3619_v41 = vadd.f32 %v4181_v37, %v4082_v61  ;;  %v4203_v21 = vadd.f32 %v4202_v38, %v4201_v35 }
 0xbba   : > { %v3663_v42 = vadd.f32 %v3657_v39, %v6068_v17  ;;  %v3660_v44 = vadd.f32 %v4203_v21, %v3619_v41 }
 0xbbc   : > { %3665 = vst [vmem:[%s5633_s25] sm:$0xff] %v3663_v42  ;;  %v3664_v18 = vadd.f32 %v3660_v44, %v6071_v62 }
 0xbbe   : > { %3666 = vst [vmem:[%s5633_s25 + $0x8] sm:$0xff] %v3664_v18 }
 0xbbf   : > { %4897 = shalt.err (!%p4894_p6)
}
 0xbc0   : > { %s4898_s25 = scalar_lea.hbm %s6219_s19, 256  ;;  %s4902_s18 = scalar_lea.hbm %s6410_s22, 512 }
 0xbc1   : > { %p4899_p11 = scmp.ne.s32.totalorder %s6219_s19, %s4898_s25  ;;  %p4903_p13 = scmp.lt.u32.totalorder %s6219_s19, %s6410_s22 }
 0xbc2   : > { %p4904_p5 = scmp.lt.u32.totalorder %s4902_s18, %s4898_s25  ;;  %p4906_p2 = scmp.lt.u32.totalorder %s4898_s25, %s6219_s19 }
 0xbc3   : > { %p4900_p3 = pnand %p4899_p11, %p6411_p0 }
 0xbc4   : > { %p4905_p1 = por %p4904_p5, %p4903_p13 }
 0xbc5   : > { %p4901_p7 = pneg %p4900_p3 }
 0xbc6   : > { %p4907_p8 = por %p4906_p2, %p4905_p1 }
 0xbc8   : > { %p4908_p9 = pnand %p4907_p8, %p4901_p7 }
 0xbca   : > { %4911 = shalt.err (!%p4908_p9)
}
 0xbcb   : > { %s5049_s28 = smov 128   ;;  %s5050_s7 = smov 8  }
 0xbcc   : > { %4312 = dma.vmem_to_hbm [thread:$0]  (%p6411_p0), %s6221_s23, 256, %s6219_s19, %s3668_s13, %s5049_s28, %s5049_s28, %s5050_s7  }
 0xbcd PF: > { %s6412_s0 = sld [smem:[#allocation32_spill]]  ;;  %s6413_s27 = sld [smem:[#allocation25_spill]] }
 0xbce   : > { %s6414_s2 = sld [smem:[#allocation38_spill]] }
 0xbd3   : > { %p4344_p12 = scmp.ge.s32.totalorder %s6412_s0, 2  ;;  %s3696_s6 = sand.u32 1, %s6413_s27  }
 0xbd4   : > { %p6415_p4 = scmp.ne.s32.totalorder %s6414_s2, 0  ;;  %s3697_s21 = scalar_lea.sflag [#allocation4], %s3696_s6 }
 0xbd6   : > { %p4340_p10 = pnand %p4344_p12, %p6415_p4 }
 0xbd8   : > { %4977 = dma.done.wait (!%p4340_p10), %s3697_s21, 256  }
 0xbd9   : > { %4979 = vsyncadd (!%p4340_p10), %s3697_s21, 4294967040  ;;  %s41_s18 = sadd.s32 1, %s6412_s0   ;;  %s6416_s25 = sld [smem:[#allocation23_spill]] }
 0xbda   : > { %p38_p6 = scmp.ge.s32.totalorder %s41_s18, 6   ;;  %s6417_s26 = sld [smem:[#allocation24_spill]] }
 0xbdb   : > { %s6418_s27 = sld [smem:[#allocation36_spill]]  ;;  %s6419_s28 = sld [smem:[#allocation26_spill]] }
 0xbdc   : > { %s6420_s29 = sld [smem:[#allocation27_spill]]  ;;  %s6421_s30 = sld [smem:[#allocation37_spill]] }
 0xbdd   : > { %s6422_s14 = sld [smem:[#allocation30_spill]]  ;;  %s6423_s15 = sld [smem:[#allocation31_spill]] }
 0xbde   : > { %s6424_s16 = sld [smem:[#allocation33_spill]]  ;;  %s6425_s17 = sld [smem:[#allocation34_spill]] }
 0xbdf   :  { %40 = sbr.rel (!%p38_p6) target bundleno = 32 (0x20), region = 221 }
 0xbe6   :  { %3702 = vsyncpa [#allocation3], 1 }
 0xbe7   :  { %3704 = vsyncpa [#allocation3 + $0x1], 1 }
 0xbe8   :  { %3705 = vsyncpa [#allocation6], 1 }
 0xbe9   :  { %3707 = vsyncpa [#allocation6 + $0x1], 1 }
 0xbea   :  { %3708 = vsyncpa [#allocation9], 1 }
 0xbeb   :  { %3710 = vsyncpa [#allocation9 + $0x1], 1 }
 0xbec   :  { %3711 = vsyncpa [#allocation12], 1 }
 0xbed   :  { %3713 = vsyncpa [#allocation12 + $0x1], 1 }
 0xbee   :  { %3714 = vsyncpa [#allocation15], 1 }
 0xbef   :  { %3716 = vsyncpa [#allocation15 + $0x1], 1 }
 0xbf0   :  { %3717 = vsyncpa [#allocation4], 1 }
 0xbf1   :  { %3719 = vsyncpa [#allocation4 + $0x1], 1 }

</bundles_post_ra>
